<compile_context>
chip_gen: v7x
topology: tpu7x:2x2x1
jax: 0.10.0
libtpu: 0.0.40
codegen_flags: <defaults>
</compile_context>

<pallas_src>
import numpy as np
import jax
import jax.numpy as jnp
from jax import lax
from jax.experimental import pallas as pl
from jax.experimental.pallas import tpu as pltpu

EPS = 1e-5          # InstanceNorm2d default eps
NEG_SLOPE = 0.01    # LeakyReLU default negative_slope


# ---------------- host-side parameter preparation ----------------

def make_banded_conv_weights(w, W):
    """PyTorch (Cout, Cin, 3, 3) -> (3, W*Cin, W*Cout) banded bf16 matrices.

    out[n, h, wo*Cout + co] = sum_kh  pad_row[n, h+kh, :] @ B[kh]
    with B[kh][wi*Cin + ci, wo*Cout + co] = w[co, ci, kh, wi - wo + 1];
    entries with wi - wo + 1 outside [0, 3) are simply absent, which IS the
    zero padding along W (so K = W*Cin exactly, no column halo needed).
    """
    w = np.asarray(w, np.float32)
    Cout, Cin, KH, KW = w.shape
    B = np.zeros((KH, W * Cin, W * Cout), np.float32)
    for kh in range(KH):
        for kw in range(KW):
            blk = w[:, :, kh, kw].T                      # (Cin, Cout)
            for wo in range(W):
                wi = wo + kw - 1
                if 0 <= wi < W:
                    B[kh,
                      wi * Cin:(wi + 1) * Cin,
                      wo * Cout:(wo + 1) * Cout] = blk
    return jnp.asarray(B, jnp.bfloat16)                  # bf16 MXU operands


def make_channel_pool(W, C):
    """(W*C, W*C) 0/1 matrix: (v @ P)[w*C + c] = sum_w' v[w'*C + c].

    Only ever applied to H-reduced (Nb, W*C) stat rows, so its MXU cost is
    negligible.  Kept f32 so the InstanceNorm statistics path stays exact.
    """
    return jnp.asarray(np.kron(np.ones((W, W), np.float32),
                               np.eye(C, dtype=np.float32)))


def _choose_batch_block(N, H, target_rows=256):
    """Pick Nb so conv matmuls see M = Nb*H ~ target_rows (fills the 256-row
    MXU on v6e/v7x, >=128 on v5e) while keeping >= 2 grid steps when possible
    (both v7x TensorCores get work and the input/output DMA can pipeline)."""
    nb = max(1, min(N, target_rows // max(H, 1)))
    while nb > 1 and -(-N // nb) < 2:        # keep at least 2 grid steps
        nb -= 1
    while N % nb:                            # avoid a ragged last block
        nb -= 1
    return nb


# ---------------- the Pallas kernel ----------------

def build_convblock2d_kernel(Nb, H, W, Cin, Cout):
    WCin, WCout = W * Cin, W * Cout
    inv_hw = 1.0 / float(H * W)

    def inorm_lrelu(v, pool):
        # v: (Nb, H, W*C) f32.  Per-image InstanceNorm (two-pass, biased var)
        # + LeakyReLU, all lane-dense and all in f32.
        # H reduction -> XLU sublane reduce; W reduction -> tiny pool matmul
        # on the H-reduced rows only.
        s = jnp.sum(v, axis=1)                                        # (Nb, WC)
        mean = jnp.dot(s, pool, preferred_element_type=jnp.float32) * inv_hw
        vm = v - mean[:, None, :]
        s2 = jnp.sum(vm * vm, axis=1)                                 # centered
        var = jnp.dot(s2, pool, preferred_element_type=jnp.float32) * inv_hw
        y = vm * lax.rsqrt(var + EPS)[:, None, :]
        return jnp.maximum(y, NEG_SLOPE * y)                          # LeakyReLU

    def conv3x3(pad_ref, bw_ref, out_lanes):
        # pad_ref: (Nb, H+2, K) f32 scratch (zero halo rows); bw_ref: (3, K, N) bf16.
        # One M = Nb*H matmul per kh tap; kw taps, input channels and the W
        # zero padding are all folded into the banded weights.  bf16 operands,
        # f32 accumulation (acc += dot per tap -> MRB accumulate on v7x).
        acc = None
        for kh in range(3):
            lhs = pad_ref[:, kh:kh + H, :].astype(jnp.bfloat16)       # (Nb,H,K)
            lhs = lhs.reshape(Nb * H, lhs.shape[-1])
            d = jnp.dot(lhs, bw_ref[kh], preferred_element_type=jnp.float32)
            acc = d if acc is None else acc + d
        return acc.reshape(Nb, H, out_lanes)

    def set_pad(pad_ref, interior, lanes):
        # Only the two halo rows per image need zeroing (full-width stores,
        # no masked column writes); the interior is fully overwritten.
        # Done every step so the "parallel" batch grid axis stays safe.
        zrow = jnp.zeros((Nb, 1, lanes), jnp.float32)
        pad_ref[:, 0:1, :] = zrow
        pad_ref[:, H + 1:H + 2, :] = zrow
        pad_ref[:, 1:H + 1, :] = interior

    def kernel(x_ref, bw1_ref, bw2_ref, pool1_ref, pool2_ref, bias2_ref,
               out_ref, pad1_ref, pad2_ref):
        x = x_ref[...]                                   # (Nb, H, W*Cin) f32

        # ---- InstanceNorm2d(in_ch) + LeakyReLU ----
        a1 = inorm_lrelu(x, pool1_ref[...])

        # ---- conv1 (its bias cancels exactly in the next InstanceNorm) ----
        set_pad(pad1_ref, a1, WCin)
        h1 = conv3x3(pad1_ref, bw1_ref, WCout)           # (Nb, H, W*Cout) f32

        # ---- InstanceNorm2d(out_ch) + LeakyReLU ----
        a2 = inorm_lrelu(h1, pool2_ref[...])

        # ---- conv2 + bias, lane-dense (W*Cout = 128) store ----
        set_pad(pad2_ref, a2, WCout)
        out_ref[...] = conv3x3(pad2_ref, bw2_ref, WCout) + bias2_ref[...]

    return kernel


# ---------------- wrapper ----------------

def convblock2d_forward(x_nchw, w1, w2, b2, *, batch_block=None):
    """x_nchw: (N, Cin, H, W) f32 -> (N, Cout, H, W) f32 (= ConvBlock2d.forward)."""
    N, Cin, H, W = x_nchw.shape
    Cout = w1.shape[0]
    WCin, WCout = W * Cin, W * Cout

    Nb = batch_block if batch_block is not None else _choose_batch_block(N, H)
    assert N % Nb == 0, "batch block must divide N"

    # lane-dense HBM layout for the kernel: (N, H, W*C)
    x_dense = jnp.transpose(x_nchw, (0, 2, 3, 1)).reshape(N, H, WCin)

    bw1 = make_banded_conv_weights(w1, W)                # (3, W*Cin,  W*Cout) bf16
    bw2 = make_banded_conv_weights(w2, W)                # (3, W*Cout, W*Cout) bf16
    pool1 = make_channel_pool(W, Cin)                    # (W*Cin,  W*Cin)  f32
    pool2 = make_channel_pool(W, Cout)                   # (W*Cout, W*Cout) f32
    bias2 = jnp.tile(b2.astype(jnp.float32), W).reshape(1, 1, WCout)

    kernel = build_convblock2d_kernel(Nb, H, W, Cin, Cout)

    def full_spec(shape):
        return pl.BlockSpec(shape, lambda n, _nd=len(shape): (0,) * _nd)

    # VMEM per step at these shapes (double-buffered in/out blocks + bf16
    # banded weights + f32 pool matrices + pad scratch) is a few hundred KiB,
    # far below every generation's 32 MiB scoped default.
    # TODO(synk): when scaling W/C/Nb, set vmem_limit_bytes against v7x's
    # 64 MiB physical VMEM and replace the (W*C)^2 pool matrices with a
    # pltpu.roll-based lane reduction; for H*W*C volumes that do not fit VMEM,
    # add an H-tile grid axis with a 1-row halo + two-pass global IN stats.
    out = pl.pallas_call(
        kernel,
        out_shape=jax.ShapeDtypeStruct((N, H, WCout), jnp.float32),
        grid_spec=pltpu.PrefetchScalarGridSpec(
            num_scalar_prefetch=0,
            grid=(N // Nb,),
            in_specs=[
                pl.BlockSpec((Nb, H, WCin), lambda n: (n, 0, 0)),
                full_spec(bw1.shape), full_spec(bw2.shape),
                full_spec(pool1.shape), full_spec(pool2.shape),
                full_spec(bias2.shape),
            ],
            out_specs=pl.BlockSpec((Nb, H, WCout), lambda n: (n, 0, 0)),
            scratch_shapes=[
                pltpu.VMEM((Nb, H + 2, WCin), jnp.float32),
                pltpu.VMEM((Nb, H + 2, WCout), jnp.float32),
            ],
        ),
        compiler_params=pltpu.CompilerParams(
            dimension_semantics=("parallel",)),          # batch blocks across cores
    )(x_dense, bw1, bw2, pool1, pool2, bias2)

    return jnp.transpose(out.reshape(N, H, W, Cout), (0, 3, 1, 2))


# ---------------- pure-JAX reference (semantics check) ----------------

def ref_forward(x, w1, b1, w2, b2):
    def inorm(v):
        m = v.mean(axis=(2, 3), keepdims=True)
        var = ((v - m) ** 2).mean(axis=(2, 3), keepdims=True)
        return (v - m) / jnp.sqrt(var + EPS)

    def lrelu(v):
        return jnp.where(v > 0, v, NEG_SLOPE * v)

    def conv(v, w, b):
        y = lax.conv_general_dilated(
            v, w, window_strides=(1, 1), padding=[(1, 1), (1, 1)],
            dimension_numbers=("NCHW", "OIHW", "NCHW"),
            precision=lax.Precision.HIGHEST)
        return y + b.reshape(1, -1, 1, 1)

    h = conv(lrelu(inorm(x)), w1, b1)
    h = conv(lrelu(inorm(h)), w2, b2)
    return h


if __name__ == "__main__":
    # N=4 so the batch-blocked path is exercised (Nb=2, grid=(2,)).
    N, in_ch, out_ch, H, W = 4, 4, 8, 16, 16

    key = jax.random.PRNGKey(0)
    kx, k1, k2, kb1, kb2 = jax.random.split(key, 5)
    x = jax.random.normal(kx, (N, in_ch, H, W), jnp.float32)

    def xavier(k, cout, cin, ksz):
        fan_in, fan_out = cin * ksz * ksz, cout * ksz * ksz
        bound = (6.0 / (fan_in + fan_out)) ** 0.5
        return jax.random.uniform(k, (cout, cin, ksz, ksz), jnp.float32, -bound, bound)

    w1 = xavier(k1, out_ch, in_ch, 3)
    w2 = xavier(k2, out_ch, out_ch, 3)
    bb1 = 1.0 / (in_ch * 9) ** 0.5
    bb2 = 1.0 / (out_ch * 9) ** 0.5
    b1 = jax.random.uniform(kb1, (out_ch,), jnp.float32, -bb1, bb1)
    b2 = jax.random.uniform(kb2, (out_ch,), jnp.float32, -bb2, bb2)

    y = convblock2d_forward(x, w1, w2, b2)
    y = jax.block_until_ready(y)

    # b1 is intentionally NOT given to the kernel: the InstanceNorm following
    # conv1 subtracts the per-channel mean, so that bias cancels exactly.
    y_ref = ref_forward(x, w1, b1, w2, b2)

    assert y.shape == (N, out_ch, H, W)
    # bf16 MXU operands with f32 accumulation through two stacked convs +
    # InstanceNorms: expected max abs error ~1e-2 vs the f32 reference.
    assert bool(jnp.allclose(y, y_ref, rtol=2e-2, atol=3e-2)), (
        "mismatch vs reference: max abs err = "
        f"{float(jnp.max(jnp.abs(y - y_ref)))}")

    print("KERNEL_OK")
</pallas_src>

<mosaic_0001>
module attributes {stable_mosaic.version = 11 : i64} {
  func.func @kernel(%arg0: i32, %arg1: memref<2x16x64xf32, #tpu.memory_space<vmem>>, %arg2: memref<3x64x128xbf16, #tpu.memory_space<vmem>>, %arg3: memref<3x128x128xbf16, #tpu.memory_space<vmem>>, %arg4: memref<64x64xf32, #tpu.memory_space<vmem>>, %arg5: memref<128x128xf32, #tpu.memory_space<vmem>>, %arg6: memref<1x1x128xf32, #tpu.memory_space<vmem>>, %arg7: memref<2x16x128xf32, #tpu.memory_space<vmem>>, %arg8: memref<2x18x64xf32, #tpu.memory_space<vmem>>, %arg9: memref<2x18x128xf32, #tpu.memory_space<vmem>>) attributes {dimension_semantics = [#tpu.dimension_semantics<parallel>], iteration_bounds = array<i64: 2>, scalar_prefetch = 0 : i64, scratch_operands = 2 : i64, tpu.core_type = #tpu.core_type<tc>, window_params = [{transform_indices = @transform_0, window_bounds = array<i64: 2, 16, 64>}, {pipeline_mode = #tpu.pipeline_mode<synchronous>, transform_indices = @transform_1, window_bounds = array<i64: 3, 64, 128>}, {pipeline_mode = #tpu.pipeline_mode<synchronous>, transform_indices = @transform_2, window_bounds = array<i64: 3, 128, 128>}, {pipeline_mode = #tpu.pipeline_mode<synchronous>, transform_indices = @transform_3, window_bounds = array<i64: 64, 64>}, {pipeline_mode = #tpu.pipeline_mode<synchronous>, transform_indices = @transform_4, window_bounds = array<i64: 128, 128>}, {pipeline_mode = #tpu.pipeline_mode<synchronous>, transform_indices = @transform_5, window_bounds = array<i64: 1, 1, 128>}, {transform_indices = @transform_6, window_bounds = array<i64: 2, 16, 128>}]} {
    %c0 = arith.constant 0 : index
    %c0_0 = arith.constant 0 : index
    %c0_1 = arith.constant 0 : index
    %0 = vector.load %arg1[%c0, %c0_0, %c0_1] : memref<2x16x64xf32, #tpu.memory_space<vmem>>, vector<2x16x64xf32>
    %c0_2 = arith.constant 0 : index
    %c0_3 = arith.constant 0 : index
    %1 = vector.load %arg4[%c0_2, %c0_3] : memref<64x64xf32, #tpu.memory_space<vmem>>, vector<64x64xf32>
    %cst = arith.constant dense<0.000000e+00> : vector<2x64xf32>
    %2 = vector.multi_reduction <add>, %0, %cst [1] : vector<2x16x64xf32> to vector<2x64xf32>
    %cst_4 = arith.constant dense<0.000000e+00> : vector<2x64xf32>
    %3 = tpu.matmul %2, %1, %cst_4 {dimension_numbers = #tpu.dot_dimension_numbers<[1], [0], [0], [1], [0, 0, 1, 1], [], []>} : vector<2x64xf32>, vector<64x64xf32>, vector<2x64xf32> -> vector<2x64xf32>
    %cst_5 = arith.constant 3.906250e-03 : f32
    %4 = vector.broadcast %cst_5 : f32 to vector<2x64xf32>
    %5 = arith.mulf %3, %4 : vector<2x64xf32>
    %6 = vector.shape_cast %5 : vector<2x64xf32> to vector<2x1x64xf32>
    %7 = vector.broadcast %6 : vector<2x1x64xf32> to vector<2x16x64xf32>
    %8 = arith.subf %0, %7 : vector<2x16x64xf32>
    %9 = arith.mulf %8, %8 : vector<2x16x64xf32>
    %cst_6 = arith.constant dense<0.000000e+00> : vector<2x64xf32>
    %10 = vector.multi_reduction <add>, %9, %cst_6 [1] : vector<2x16x64xf32> to vector<2x64xf32>
    %cst_7 = arith.constant dense<0.000000e+00> : vector<2x64xf32>
    %11 = tpu.matmul %10, %1, %cst_7 {dimension_numbers = #tpu.dot_dimension_numbers<[1], [0], [0], [1], [0, 0, 1, 1], [], []>} : vector<2x64xf32>, vector<64x64xf32>, vector<2x64xf32> -> vector<2x64xf32>
    %cst_8 = arith.constant 3.906250e-03 : f32
    %12 = vector.broadcast %cst_8 : f32 to vector<2x64xf32>
    %13 = arith.mulf %11, %12 : vector<2x64xf32>
    %cst_9 = arith.constant 9.99999974E-6 : f32
    %14 = vector.broadcast %cst_9 : f32 to vector<2x64xf32>
    %15 = arith.addf %13, %14 : vector<2x64xf32>
    %16 = math.rsqrt %15 : vector<2x64xf32>
    %17 = vector.shape_cast %16 : vector<2x64xf32> to vector<2x1x64xf32>
    %18 = vector.broadcast %17 : vector<2x1x64xf32> to vector<2x16x64xf32>
    %19 = arith.mulf %8, %18 : vector<2x16x64xf32>
    %cst_10 = arith.constant 0.00999999977 : f32
    %20 = vector.broadcast %cst_10 : f32 to vector<2x16x64xf32>
    %21 = arith.mulf %20, %19 : vector<2x16x64xf32>
    %22 = arith.maximumf %19, %21 : vector<2x16x64xf32>
    %cst_11 = arith.constant 0.000000e+00 : f32
    %23 = vector.broadcast %cst_11 : f32 to vector<2x1x64xf32>
    %c0_12 = arith.constant 0 : index
    %c0_13 = arith.constant 0 : index
    %c0_14 = arith.constant 0 : index
    %24 = vector.load %arg8[%c0_12, %c0_13, %c0_14] : memref<2x18x64xf32, #tpu.memory_space<vmem>>, vector<2x1x64xf32>
    tpu.vector_store %arg8[%c0_12, %c0_13, %c0_14], %23 {strides = array<i32>} : memref<2x18x64xf32, #tpu.memory_space<vmem>>, vector<2x1x64xf32>,
    %c0_15 = arith.constant 0 : index
    %c17 = arith.constant 17 : index
    %c0_16 = arith.constant 0 : index
    %25 = vector.load %arg8[%c0_15, %c17, %c0_16] : memref<2x18x64xf32, #tpu.memory_space<vmem>>, vector<2x1x64xf32>
    tpu.vector_store %arg8[%c0_15, %c17, %c0_16], %23 {strides = array<i32>} : memref<2x18x64xf32, #tpu.memory_space<vmem>>, vector<2x1x64xf32>,
    %c0_17 = arith.constant 0 : index
    %c1 = arith.constant 1 : index
    %c0_18 = arith.constant 0 : index
    %26 = vector.load %arg8[%c0_17, %c1, %c0_18] : memref<2x18x64xf32, #tpu.memory_space<vmem>>, vector<2x16x64xf32>
    tpu.vector_store %arg8[%c0_17, %c1, %c0_18], %22 {strides = array<i32>} : memref<2x18x64xf32, #tpu.memory_space<vmem>>, vector<2x16x64xf32>,
    %c0_19 = arith.constant 0 : index
    %c0_20 = arith.constant 0 : index
    %c0_21 = arith.constant 0 : index
    %27 = vector.load %arg8[%c0_19, %c0_20, %c0_21] : memref<2x18x64xf32, #tpu.memory_space<vmem>>, vector<2x16x64xf32>
    %28 = arith.truncf %27 : vector<2x16x64xf32> to vector<2x16x64xbf16>
    %29 = vector.shape_cast %28 : vector<2x16x64xbf16> to vector<32x64xbf16>
    %c0_22 = arith.constant 0 : index
    %c0_23 = arith.constant 0 : index
    %c0_24 = arith.constant 0 : index
    %30 = vector.load %arg2[%c0_22, %c0_23, %c0_24] : memref<3x64x128xbf16, #tpu.memory_space<vmem>>, vector<1x64x128xbf16>
    %31 = vector.shape_cast %30 : vector<1x64x128xbf16> to vector<64x128xbf16>
    %cst_25 = arith.constant dense<0.000000e+00> : vector<32x128xf32>
    %32 = tpu.matmul %29, %31, %cst_25 {dimension_numbers = #tpu.dot_dimension_numbers<[1], [0], [0], [1], [0, 0, 1, 1], [], []>} : vector<32x64xbf16>, vector<64x128xbf16>, vector<32x128xf32> -> vector<32x128xf32>
    %c0_26 = arith.constant 0 : index
    %c1_27 = arith.constant 1 : index
    %c0_28 = arith.constant 0 : index
    %33 = vector.load %arg8[%c0_26, %c1_27, %c0_28] : memref<2x18x64xf32, #tpu.memory_space<vmem>>, vector<2x16x64xf32>
    %34 = arith.truncf %33 : vector<2x16x64xf32> to vector<2x16x64xbf16>
    %35 = vector.shape_cast %34 : vector<2x16x64xbf16> to vector<32x64xbf16>
    %c1_29 = arith.constant 1 : index
    %c0_30 = arith.constant 0 : index
    %c0_31 = arith.constant 0 : index
    %36 = vector.load %arg2[%c1_29, %c0_30, %c0_31] : memref<3x64x128xbf16, #tpu.memory_space<vmem>>, vector<1x64x128xbf16>
    %37 = vector.shape_cast %36 : vector<1x64x128xbf16> to vector<64x128xbf16>
    %cst_32 = arith.constant dense<0.000000e+00> : vector<32x128xf32>
    %38 = tpu.matmul %35, %37, %cst_32 {dimension_numbers = #tpu.dot_dimension_numbers<[1], [0], [0], [1], [0, 0, 1, 1], [], []>} : vector<32x64xbf16>, vector<64x128xbf16>, vector<32x128xf32> -> vector<32x128xf32>
    %39 = arith.addf %32, %38 : vector<32x128xf32>
    %c0_33 = arith.constant 0 : index
    %c2 = arith.constant 2 : index
    %c0_34 = arith.constant 0 : index
    %40 = vector.load %arg8[%c0_33, %c2, %c0_34] : memref<2x18x64xf32, #tpu.memory_space<vmem>>, vector<2x16x64xf32>
    %41 = arith.truncf %40 : vector<2x16x64xf32> to vector<2x16x64xbf16>
    %42 = vector.shape_cast %41 : vector<2x16x64xbf16> to vector<32x64xbf16>
    %c2_35 = arith.constant 2 : index
    %c0_36 = arith.constant 0 : index
    %c0_37 = arith.constant 0 : index
    %43 = vector.load %arg2[%c2_35, %c0_36, %c0_37] : memref<3x64x128xbf16, #tpu.memory_space<vmem>>, vector<1x64x128xbf16>
    %44 = vector.shape_cast %43 : vector<1x64x128xbf16> to vector<64x128xbf16>
    %cst_38 = arith.constant dense<0.000000e+00> : vector<32x128xf32>
    %45 = tpu.matmul %42, %44, %cst_38 {dimension_numbers = #tpu.dot_dimension_numbers<[1], [0], [0], [1], [0, 0, 1, 1], [], []>} : vector<32x64xbf16>, vector<64x128xbf16>, vector<32x128xf32> -> vector<32x128xf32>
    %46 = arith.addf %39, %45 : vector<32x128xf32>
    %47 = vector.shape_cast %46 : vector<32x128xf32> to vector<2x16x128xf32>
    %c0_39 = arith.constant 0 : index
    %c0_40 = arith.constant 0 : index
    %48 = vector.load %arg5[%c0_39, %c0_40] : memref<128x128xf32, #tpu.memory_space<vmem>>, vector<128x128xf32>
    %cst_41 = arith.constant dense<0.000000e+00> : vector<2x128xf32>
    %49 = vector.multi_reduction <add>, %47, %cst_41 [1] : vector<2x16x128xf32> to vector<2x128xf32>
    %cst_42 = arith.constant dense<0.000000e+00> : vector<2x128xf32>
    %50 = tpu.matmul %49, %48, %cst_42 {dimension_numbers = #tpu.dot_dimension_numbers<[1], [0], [0], [1], [0, 0, 1, 1], [], []>} : vector<2x128xf32>, vector<128x128xf32>, vector<2x128xf32> -> vector<2x128xf32>
    %cst_43 = arith.constant 3.906250e-03 : f32
    %51 = vector.broadcast %cst_43 : f32 to vector<2x128xf32>
    %52 = arith.mulf %50, %51 : vector<2x128xf32>
    %53 = vector.shape_cast %52 : vector<2x128xf32> to vector<2x1x128xf32>
    %54 = vector.broadcast %53 : vector<2x1x128xf32> to vector<2x16x128xf32>
    %55 = arith.subf %47, %54 : vector<2x16x128xf32>
    %56 = arith.mulf %55, %55 : vector<2x16x128xf32>
    %cst_44 = arith.constant dense<0.000000e+00> : vector<2x128xf32>
    %57 = vector.multi_reduction <add>, %56, %cst_44 [1] : vector<2x16x128xf32> to vector<2x128xf32>
    %cst_45 = arith.constant dense<0.000000e+00> : vector<2x128xf32>
    %58 = tpu.matmul %57, %48, %cst_45 {dimension_numbers = #tpu.dot_dimension_numbers<[1], [0], [0], [1], [0, 0, 1, 1], [], []>} : vector<2x128xf32>, vector<128x128xf32>, vector<2x128xf32> -> vector<2x128xf32>
    %cst_46 = arith.constant 3.906250e-03 : f32
    %59 = vector.broadcast %cst_46 : f32 to vector<2x128xf32>
    %60 = arith.mulf %58, %59 : vector<2x128xf32>
    %cst_47 = arith.constant 9.99999974E-6 : f32
    %61 = vector.broadcast %cst_47 : f32 to vector<2x128xf32>
    %62 = arith.addf %60, %61 : vector<2x128xf32>
    %63 = math.rsqrt %62 : vector<2x128xf32>
    %64 = vector.shape_cast %63 : vector<2x128xf32> to vector<2x1x128xf32>
    %65 = vector.broadcast %64 : vector<2x1x128xf32> to vector<2x16x128xf32>
    %66 = arith.mulf %55, %65 : vector<2x16x128xf32>
    %cst_48 = arith.constant 0.00999999977 : f32
    %67 = vector.broadcast %cst_48 : f32 to vector<2x16x128xf32>
    %68 = arith.mulf %67, %66 : vector<2x16x128xf32>
    %69 = arith.maximumf %66, %68 : vector<2x16x128xf32>
    %cst_49 = arith.constant 0.000000e+00 : f32
    %70 = vector.broadcast %cst_49 : f32 to vector<2x1x128xf32>
    %c0_50 = arith.constant 0 : index
    %c0_51 = arith.constant 0 : index
    %c0_52 = arith.constant 0 : index
    %71 = vector.load %arg9[%c0_50, %c0_51, %c0_52] : memref<2x18x128xf32, #tpu.memory_space<vmem>>, vector<2x1x128xf32>
    tpu.vector_store %arg9[%c0_50, %c0_51, %c0_52], %70 {strides = array<i32>} : memref<2x18x128xf32, #tpu.memory_space<vmem>>, vector<2x1x128xf32>,
    %c0_53 = arith.constant 0 : index
    %c17_54 = arith.constant 17 : index
    %c0_55 = arith.constant 0 : index
    %72 = vector.load %arg9[%c0_53, %c17_54, %c0_55] : memref<2x18x128xf32, #tpu.memory_space<vmem>>, vector<2x1x128xf32>
    tpu.vector_store %arg9[%c0_53, %c17_54, %c0_55], %70 {strides = array<i32>} : memref<2x18x128xf32, #tpu.memory_space<vmem>>, vector<2x1x128xf32>,
    %c0_56 = arith.constant 0 : index
    %c1_57 = arith.constant 1 : index
    %c0_58 = arith.constant 0 : index
    %73 = vector.load %arg9[%c0_56, %c1_57, %c0_58] : memref<2x18x128xf32, #tpu.memory_space<vmem>>, vector<2x16x128xf32>
    tpu.vector_store %arg9[%c0_56, %c1_57, %c0_58], %69 {strides = array<i32>} : memref<2x18x128xf32, #tpu.memory_space<vmem>>, vector<2x16x128xf32>,
    %c0_59 = arith.constant 0 : index
    %c0_60 = arith.constant 0 : index
    %c0_61 = arith.constant 0 : index
    %74 = vector.load %arg9[%c0_59, %c0_60, %c0_61] : memref<2x18x128xf32, #tpu.memory_space<vmem>>, vector<2x16x128xf32>
    %75 = arith.truncf %74 : vector<2x16x128xf32> to vector<2x16x128xbf16>
    %76 = vector.shape_cast %75 : vector<2x16x128xbf16> to vector<32x128xbf16>
    %c0_62 = arith.constant 0 : index
    %c0_63 = arith.constant 0 : index
    %c0_64 = arith.constant 0 : index
    %77 = vector.load %arg3[%c0_62, %c0_63, %c0_64] : memref<3x128x128xbf16, #tpu.memory_space<vmem>>, vector<1x128x128xbf16>
    %78 = vector.shape_cast %77 : vector<1x128x128xbf16> to vector<128x128xbf16>
    %cst_65 = arith.constant dense<0.000000e+00> : vector<32x128xf32>
    %79 = tpu.matmul %76, %78, %cst_65 {dimension_numbers = #tpu.dot_dimension_numbers<[1], [0], [0], [1], [0, 0, 1, 1], [], []>} : vector<32x128xbf16>, vector<128x128xbf16>, vector<32x128xf32> -> vector<32x128xf32>
    %c0_66 = arith.constant 0 : index
    %c1_67 = arith.constant 1 : index
    %c0_68 = arith.constant 0 : index
    %80 = vector.load %arg9[%c0_66, %c1_67, %c0_68] : memref<2x18x128xf32, #tpu.memory_space<vmem>>, vector<2x16x128xf32>
    %81 = arith.truncf %80 : vector<2x16x128xf32> to vector<2x16x128xbf16>
    %82 = vector.shape_cast %81 : vector<2x16x128xbf16> to vector<32x128xbf16>
    %c1_69 = arith.constant 1 : index
    %c0_70 = arith.constant 0 : index
    %c0_71 = arith.constant 0 : index
    %83 = vector.load %arg3[%c1_69, %c0_70, %c0_71] : memref<3x128x128xbf16, #tpu.memory_space<vmem>>, vector<1x128x128xbf16>
    %84 = vector.shape_cast %83 : vector<1x128x128xbf16> to vector<128x128xbf16>
    %cst_72 = arith.constant dense<0.000000e+00> : vector<32x128xf32>
    %85 = tpu.matmul %82, %84, %cst_72 {dimension_numbers = #tpu.dot_dimension_numbers<[1], [0], [0], [1], [0, 0, 1, 1], [], []>} : vector<32x128xbf16>, vector<128x128xbf16>, vector<32x128xf32> -> vector<32x128xf32>
    %86 = arith.addf %79, %85 : vector<32x128xf32>
    %c0_73 = arith.constant 0 : index
    %c2_74 = arith.constant 2 : index
    %c0_75 = arith.constant 0 : index
    %87 = vector.load %arg9[%c0_73, %c2_74, %c0_75] : memref<2x18x128xf32, #tpu.memory_space<vmem>>, vector<2x16x128xf32>
    %88 = arith.truncf %87 : vector<2x16x128xf32> to vector<2x16x128xbf16>
    %89 = vector.shape_cast %88 : vector<2x16x128xbf16> to vector<32x128xbf16>
    %c2_76 = arith.constant 2 : index
    %c0_77 = arith.constant 0 : index
    %c0_78 = arith.constant 0 : index
    %90 = vector.load %arg3[%c2_76, %c0_77, %c0_78] : memref<3x128x128xbf16, #tpu.memory_space<vmem>>, vector<1x128x128xbf16>
    %91 = vector.shape_cast %90 : vector<1x128x128xbf16> to vector<128x128xbf16>
    %cst_79 = arith.constant dense<0.000000e+00> : vector<32x128xf32>
    %92 = tpu.matmul %89, %91, %cst_79 {dimension_numbers = #tpu.dot_dimension_numbers<[1], [0], [0], [1], [0, 0, 1, 1], [], []>} : vector<32x128xbf16>, vector<128x128xbf16>, vector<32x128xf32> -> vector<32x128xf32>
    %93 = arith.addf %86, %92 : vector<32x128xf32>
    %94 = vector.shape_cast %93 : vector<32x128xf32> to vector<2x16x128xf32>
    %c0_80 = arith.constant 0 : index
    %c0_81 = arith.constant 0 : index
    %c0_82 = arith.constant 0 : index
    %95 = vector.load %arg6[%c0_80, %c0_81, %c0_82] : memref<1x1x128xf32, #tpu.memory_space<vmem>>, vector<1x1x128xf32>
    %96 = vector.broadcast %95 : vector<1x1x128xf32> to vector<2x16x128xf32>
    %97 = arith.addf %94, %96 : vector<2x16x128xf32>
    %c0_83 = arith.constant 0 : index
    %c0_84 = arith.constant 0 : index
    %c0_85 = arith.constant 0 : index
    %98 = vector.load %arg7[%c0_83, %c0_84, %c0_85] : memref<2x16x128xf32, #tpu.memory_space<vmem>>, vector<2x16x128xf32>
    tpu.vector_store %arg7[%c0_83, %c0_84, %c0_85], %97 {strides = array<i32>} : memref<2x16x128xf32, #tpu.memory_space<vmem>>, vector<2x16x128xf32>,
    return
  }
  func.func @transform_0(%arg0: i32) -> (i32, i32, i32) {
    %c0_i32 = arith.constant 0 : i32
    %c0_i32_0 = arith.constant 0 : i32
    %c0_i32_1 = arith.constant 0 : i32
    return %arg0, %c0_i32, %c0_i32_0 : i32, i32, i32
  }
  func.func @transform_1(%arg0: i32) -> (i32, i32, i32) {
    %c0_i32 = arith.constant 0 : i32
    %c0_i32_0 = arith.constant 0 : i32
    %c0_i32_1 = arith.constant 0 : i32
    %c0_i32_2 = arith.constant 0 : i32
    return %c0_i32, %c0_i32_0, %c0_i32_1 : i32, i32, i32
  }
  func.func @transform_2(%arg0: i32) -> (i32, i32, i32) {
    %c0_i32 = arith.constant 0 : i32
    %c0_i32_0 = arith.constant 0 : i32
    %c0_i32_1 = arith.constant 0 : i32
    %c0_i32_2 = arith.constant 0 : i32
    return %c0_i32, %c0_i32_0, %c0_i32_1 : i32, i32, i32
  }
  func.func @transform_3(%arg0: i32) -> (i32, i32) {
    %c0_i32 = arith.constant 0 : i32
    %c0_i32_0 = arith.constant 0 : i32
    %c0_i32_1 = arith.constant 0 : i32
    return %c0_i32, %c0_i32_0 : i32, i32
  }
  func.func @transform_4(%arg0: i32) -> (i32, i32) {
    %c0_i32 = arith.constant 0 : i32
    %c0_i32_0 = arith.constant 0 : i32
    %c0_i32_1 = arith.constant 0 : i32
    return %c0_i32, %c0_i32_0 : i32, i32
  }
  func.func @transform_5(%arg0: i32) -> (i32, i32, i32) {
    %c0_i32 = arith.constant 0 : i32
    %c0_i32_0 = arith.constant 0 : i32
    %c0_i32_1 = arith.constant 0 : i32
    %c0_i32_2 = arith.constant 0 : i32
    return %c0_i32, %c0_i32_0, %c0_i32_1 : i32, i32, i32
  }
  func.func @transform_6(%arg0: i32) -> (i32, i32, i32) {
    %c0_i32 = arith.constant 0 : i32
    %c0_i32_0 = arith.constant 0 : i32
    %c0_i32_1 = arith.constant 0 : i32
    return %arg0, %c0_i32, %c0_i32_0 : i32, i32, i32
  }
}

</mosaic_0001>

<bundles_post_ra>
// kernel: tpu_custom_call.1
= control target key start
LH: loop header
LB: loop body
LE: loop exit
PB: predicated region body
PF: predicated region fallthrough
CT: control target
= control target key end

     0   :  { %11 = vsyncpa [#allocation5], 0  ;;  %s3024_s0 = inlined_call_operand.hbm [shape: f32[4,16,64], index: 0, kind: input, shape index: {}]   ;;  %s3025_s1 = inlined_call_operand.hbm [shape: bf16[3,64,128], index: 1, kind: input, shape index: {}]   ;;  %s3026_s2 = inlined_call_operand.hbm [shape: bf16[3,128,128], index: 2, kind: input, shape index: {}]   ;;  %s3027_s3 = inlined_call_operand.hbm [shape: f32[64,64], index: 3, kind: input, shape index: {}]   ;;  %s3028_s4 = inlined_call_operand.hbm [shape: f32[128,128], index: 4, kind: input, shape index: {}]   ;;  %s3029_s5 = inlined_call_operand.vmem [shape: f32[1,1,128], index: 5, kind: input, shape index: {}]   ;;  %s3030_s6 = inlined_call_operand.hbm [shape: f32[4,16,128], index: 6, kind: output, shape index: {}]  }
   0x1   :  { %13 = vsyncpa [#allocation5 + $0x1], 0 }
   0x2   :  { %14 = vsyncpa [#allocation8], 0 }
   0x3   :  { %15 = vsyncpa [#allocation11], 0 }
   0x4   :  { %16 = vsyncpa [#allocation6], 0 }
   0x5   :  { %18 = vsyncpa [#allocation6 + $0x1], 0  ;;  %s2581_s21 = smov 0   ;;  %s2583_s22 = smov 0  }
   0x6   :  { %s2585_s23 = smov 0   ;;  %s2587_s24 = smov 0  }
   0x7 LB: > { %s2602_s25 = sadd.s32 4294967295, %s2528_s24   ;;  %s1710_s26 = sadd.s32 4294967294, %s2528_s24   ;;  %s2528_s24 = sphi %s2587_s24, %s3060_s24   ;;  %s2524_s23 = sphi %s2585_s23, %s3059_s23   ;;  %s2520_s22 = sphi %s2583_s22, %s3058_s22   ;;  %s2516_s21 = sphi %s2581_s21, %s3057_s21  }
   0x8   : > { %p44_p0 = scmp.ne.s32.totalorder %s2520_s22, %s2516_s21  ;;  %p3031_p1 = scmp.eq.s32.totalorder %s2602_s25, 0 }
   0x9   : > { %p179_p3 = scmp.eq.s32.totalorder %s1710_s26, 1  ;;  %p1711_p5 = scmp.ge.s32.totalorder %s2528_s24, 1 }
   0xa   : > { %p2611_p4 = por %p3031_p1, %p44_p0  ;;  %p186_p7 = scmp.lt.s32.totalorder %s2528_s24, 3 }
   0xb   : > { %p2616_p6 = por %p179_p3, %p44_p0  ;;  %s2530_s30 = smov [#allocation7]  }
   0xc   : > { %s3038_s27 = scalar_select %p2611_p4, 1, 0 }
   0xd   : > { %s3039_s28 = scalar_select %p2616_p6, 1, 0 }
   0xe   : > { %p2621_p8 = pnand %p1711_p5, %p186_p7  ;;  %s198_s7 = sshll.u32 %s2530_s30, 4  ;;  %s2625_s7 = int_to_ptr.vmem [resolvable:$true] %s198_s7 }
   0xf   : > { %s2531_s9 = smov [#allocation10]   ;;  %s2312_s13 = scalar_lea.hbm %s3025_s1, 1536 }
  0x10   : > { %s3040_s29 = scalar_select %p2621_p8, 1, 0 }
  0x11   : > { %p2195_p9 = pneg %p2621_p8  ;;  %s224_s10 = sshll.u32 %s2531_s9, 4  ;;  %s2636_s10 = int_to_ptr.vmem [resolvable:$true] %s224_s10 }
  0x12   : > { %p2313_p12 = scmp.ne.s32.totalorder %s3025_s1, %s2312_s13  ;;  %p2319_p5 = scmp.lt.u32.totalorder %s2312_s13, %s3025_s1 }
  0x13   : > { %p2632_p11 = pnand %p2195_p9, %p3031_p1 }
  0x15   : > { %p2646_p13 = pneg %p2632_p11 }
  0x17   : > { %p2315_p0 = pnand %p2646_p13, %p2313_p12 }
  0x19   : > { %p2316_p3 = pneg %p2315_p0 }
  0x1b   : > { %p2321_p7 = pnand %p2319_p5, %p2316_p3 }
  0x1d   : > { %2324 = shalt.err (!%p2321_p7)
}
  0x1e   : > { %s2325_s19 = scalar_lea.vmem %s2625_s7, 1536  ;;  %p2333_p2 = scmp.lt.s32.totalorder %s2625_s7, %s2625_s7 }
  0x1f   : > { %p2326_p9 = scmp.ne.s32.totalorder %s2625_s7, %s2325_s19  ;;  %p2334_p6 = scmp.lt.s32.totalorder %s2325_s19, %s2325_s19 }
  0x21   : > { %p2328_p10 = pnand %p2326_p9, %p2646_p13  ;;  %p2335_p12 = por %p2334_p6, %p2333_p2 }
  0x23   : > { %p2329_p1 = pneg %p2328_p10 }
  0x25   : > { %p2336_p0 = pnand %p2335_p12, %p2329_p1 }
  0x27   : > { %2339 = shalt.err (!%p2336_p0)
}
  0x28   : > { %s3032_s20 = smov 64   ;;  %s3033_s26 = smov 4  }
  0x29   : > { %2198 = dma.hbm_to_vmem [thread:$0]  (!%p2632_p11), %s3025_s1, 1536, %s2625_s7, [#allocation8], %s3032_s20, %s3032_s20, %s3033_s26  }
  0x2a   : > { %s2340_s13 = scalar_lea.hbm %s3027_s3, 1024 }
  0x2b   : > { %p2341_p1 = scmp.ne.s32.totalorder %s3027_s3, %s2340_s13  ;;  %p2347_p10 = scmp.lt.u32.totalorder %s2340_s13, %s3027_s3 }
  0x2d   : > { %p2343_p2 = pnand %p2341_p1, %p2646_p13 }
  0x2f   : > { %p2344_p6 = pneg %p2343_p2 }
  0x31   : > { %p2349_p3 = pnand %p2347_p10, %p2344_p6 }
  0x33   : > { %2352 = shalt.err (!%p2349_p3)
}
  0x34   : > { %s2353_s7 = scalar_lea.vmem %s2636_s10, 1024  ;;  %p2361_p12 = scmp.lt.s32.totalorder %s2636_s10, %s2636_s10 }
  0x35   : > { %p2354_p5 = scmp.ne.s32.totalorder %s2636_s10, %s2353_s7  ;;  %p2362_p0 = scmp.lt.s32.totalorder %s2353_s7, %s2353_s7 }
  0x37   : > { %p2356_p7 = pnand %p2354_p5, %p2646_p13  ;;  %p2363_p1 = por %p2362_p0, %p2361_p12 }
  0x39   : > { %p2357_p9 = pneg %p2356_p7 }
  0x3b   : > { %p2364_p2 = pnand %p2363_p1, %p2357_p9 }
  0x3d   : > { %2367 = shalt.err (!%p2364_p2)
}
  0x3e   : > { %s3036_s19 = smov 128   ;;  %s2535_s30 = smov 8  }
  0x3f   : > { %2204 = dma.hbm_to_vmem [thread:$0]  (!%p2632_p11), %s3027_s3, 1024, %s2636_s10, [#allocation11], %s3036_s19, %s3036_s19, %s2535_s30  }
  0x40   : > { %s2536_s12 = smov [#allocation9]   ;;  %s2537_s14 = smov [#allocation12]  }
  0x41   : > { %s211_s13 = sshll.u32 %s2536_s12, 4  ;;  %s237_s15 = sshll.u32 %s2537_s14, 4  ;;  %s212_s13 = int_to_ptr.vmem [resolvable:$true] %s211_s13  ;;  %s2696_s15 = int_to_ptr.vmem [resolvable:$true] %s237_s15 }
  0x42   : > { %s2368_s7 = scalar_lea.hbm %s3026_s2, 3072 }
  0x43   : > { %p2369_p6 = scmp.ne.s32.totalorder %s3026_s2, %s2368_s7  ;;  %p2375_p5 = scmp.lt.u32.totalorder %s2368_s7, %s3026_s2 }
  0x45   : > { %p2371_p10 = pnand %p2369_p6, %p2646_p13 }
  0x47   : > { %p2372_p3 = pneg %p2371_p10 }
  0x49   : > { %p2377_p7 = pnand %p2375_p5, %p2372_p3 }
  0x4b   : > { %2380 = shalt.err (!%p2377_p7)
}
  0x4c   : > { %s2381_s11 = scalar_lea.vmem %s212_s13, 3072  ;;  %p2389_p1 = scmp.lt.s32.totalorder %s212_s13, %s212_s13 }
  0x4d   : > { %p2382_p9 = scmp.ne.s32.totalorder %s212_s13, %s2381_s11  ;;  %p2390_p2 = scmp.lt.s32.totalorder %s2381_s11, %s2381_s11 }
  0x4f   : > { %p2384_p12 = pnand %p2382_p9, %p2646_p13  ;;  %p2391_p4 = por %p2390_p2, %p2389_p1 }
  0x51   : > { %p2385_p0 = pneg %p2384_p12 }
  0x53   : > { %p2392_p8 = pnand %p2391_p4, %p2385_p0 }
  0x55   : > { %2395 = shalt.err (!%p2392_p8)
}
  0x56   : > { %s3043_s20 = smov 4   ;;  %s3044_s26 = smov 64  }
  0x57   : > { %2201 = dma.hbm_to_vmem [thread:$0]  (!%p2632_p11), %s3026_s2, 3072, %s212_s13, [#allocation8], %s3044_s26, %s3044_s26, %s3043_s20  }
  0x58   : > { %s2396_s7 = scalar_lea.hbm %s3028_s4, 2048 }
  0x59   : > { %p2397_p6 = scmp.ne.s32.totalorder %s3028_s4, %s2396_s7  ;;  %p2403_p10 = scmp.lt.u32.totalorder %s2396_s7, %s3028_s4 }
  0x5b   : > { %p2399_p4 = pnand %p2397_p6, %p2646_p13 }
  0x5d   : > { %p2400_p8 = pneg %p2399_p4 }
  0x5f   : > { %p2405_p3 = pnand %p2403_p10, %p2400_p8 }
  0x61   : > { %2408 = shalt.err (!%p2405_p3)
}
  0x62   : > { %s2409_s13 = scalar_lea.vmem %s2696_s15, 2048  ;;  %p2417_p12 = scmp.lt.s32.totalorder %s2696_s15, %s2696_s15 }
  0x63   : > { %p2410_p5 = scmp.ne.s32.totalorder %s2696_s15, %s2409_s13  ;;  %p2418_p0 = scmp.lt.s32.totalorder %s2409_s13, %s2409_s13 }
  0x65   : > { %p2412_p7 = pnand %p2410_p5, %p2646_p13  ;;  %p2419_p1 = por %p2418_p0, %p2417_p12 }
  0x67   : > { %p2413_p9 = pneg %p2412_p7 }
  0x69   : > { %p2420_p2 = pnand %p2419_p1, %p2413_p9 }
  0x6b   : > { %2423 = shalt.err (!%p2420_p2)
}
  0x6c   : > { %s3045_s19 = smov 128   ;;  %s2746_s8 = sadd.s32 1, %s2528_s24  }
  0x6d   : > { %2207 = dma.hbm_to_vmem [thread:$0]  (!%p2632_p11), %s3028_s4, 2048, %s2696_s15, [#allocation11], %s3045_s19, %s3045_s19, %s2535_s30  }
  0x6e   : > { %s28_s16 = ssub.s32 %s2528_s24, %s2746_s8  ;;  %s31_s12 = sadd.s32 1, %s2524_s23 }
  0x6f   : > { %p29_p13 = scmp.eq.s32.totalorder %s28_s16, 0  ;;  %p38_p6 = scmp.ne.s32.totalorder %s2524_s23, %s2520_s22 }
  0x70   : > { %p39_p4 = scmp.eq.s32.totalorder %s2528_s24, 0  ;;  %p3046_p10 = scmp.eq.s32.totalorder %s2602_s25, 1 }
  0x71   : > { %s2755_s14 = scalar_select %p29_p13, %s2524_s23, %s31_s12  }
  0x72   : > { %p40_p8 = por %p39_p4, %p38_p6  ;;  %p2759_p3 = por %p3046_p10, %p38_p6 }
  0x73   : > { %p2220_p5 = scmp.lt.s32.totalorder %s2528_s24, 2  ;;  %s254_s18 = sand.u32 1, %s2524_s23  }
  0x74   : > { %s1717_s7 = sshll.u32 %s254_s18, 5  ;;  %s1780_s15 = sshll.u32 %s2528_s24, 9 }
  0x75   : > { %s2769_s11 = scalar_lea.hbm %s3024_s0, %s1780_s15  ;;  %s258_s13 = scalar_lea.vmem [#allocation4], %s1717_s7 }
  0x76   : > { %s266_s20 = sshll.u32 %s258_s13, 4  ;;  %p2773_p11 = pnand %p2220_p5, %p40_p8  ;;  %s2771_s20 = int_to_ptr.vmem [resolvable:$true] %s266_s20 }
  0x77   : > { %s2777_s16 = scalar_lea.sflag [#allocation5], %s254_s18  ;;  %s2424_s12 = scalar_lea.hbm %s2769_s11, 512 }
  0x78   : > { %p2425_p7 = scmp.ne.s32.totalorder %s2769_s11, %s2424_s12  ;;  %p2426_p9 = pneg %p2773_p11 }
  0x79   : > { %s2429_s9 = scalar_lea.hbm %s3024_s0, 1024  ;;  %p2430_p1 = scmp.lt.u32.totalorder %s2769_s11, %s3024_s0 }
  0x7a   : > { %p2427_p12 = pnand %p2426_p9, %p2425_p7  ;;  %p2431_p2 = scmp.lt.u32.totalorder %s2429_s9, %s2424_s12 }
  0x7b   : > { %p2433_p6 = scmp.lt.u32.totalorder %s2424_s12, %s2769_s11 }
  0x7c   : > { %p2428_p0 = pneg %p2427_p12  ;;  %p2432_p13 = por %p2431_p2, %p2430_p1 }
  0x7e   : > { %p2434_p4 = por %p2433_p6, %p2432_p13 }
  0x80   : > { %p2435_p8 = pnand %p2434_p4, %p2428_p0 }
  0x82   : > { %2438 = shalt.err (!%p2435_p8)
}
  0x83   : > { %s2439_s18 = scalar_lea.vmem %s2771_s20, 512  ;;  %s2538_s7 = smov [#allocation4]  }
  0x84   : > { %p2440_p10 = scmp.ne.s32.totalorder %s2771_s20, %s2439_s18  ;;  %s2444_s15 = sshll.u32 %s2538_s7, 4  ;;  %s2445_s15 = int_to_ptr.vmem [resolvable:$false] %s2444_s15 }
  0x85   : > { %s2446_s10 = scalar_lea.vmem %s2445_s15, 1024  ;;  %p2447_p12 = scmp.lt.s32.totalorder %s2771_s20, %s2445_s15 }
  0x86   : > { %p2442_p5 = pnand %p2440_p10, %p2426_p9  ;;  %p2448_p1 = scmp.lt.s32.totalorder %s2446_s10, %s2439_s18 }
  0x88   : > { %p2443_p7 = pneg %p2442_p5  ;;  %p2449_p2 = por %p2448_p1, %p2447_p12 }
  0x8a   : > { %p2450_p13 = pnand %p2449_p2, %p2443_p7 }
  0x8c   : > { %2453 = shalt.err (!%p2450_p13)
}
  0x8d   : > { %2211 = dma.hbm_to_vmem [thread:$0]  (!%p2773_p11), %s2769_s11, 512, %s2771_s20, %s2777_s16, %s3045_s19, %s3045_s19, %s2535_s30  }
  0x8e   : > { %p3049_p9 = scmp.ne.s32.totalorder %s3040_s29, 0 }
  0x8f   : > { %s2811_s12 = sand.u32 (!%p3049_p9), 1, %s2520_s22   ;;  %p3050_p0 = scmp.ne.s32.totalorder (!%p3049_p9), %s3038_s27, 0 }
  0x90   : > { %278 = sbr.rel (%p3049_p9) target bundleno = 1692 (0x69c), region = 44  ;;  %s1722_s9 = sshll.u32 (!%p3049_p9), %s2811_s12, 5 }
  0x91   : > { %s281_s13 = scalar_lea.sflag (!%p3049_p9), [#allocation5], %s2811_s12  ;;  %s284_s26 = scalar_lea.vmem (!%p3049_p9), [#allocation4], %s1722_s9 }
  0x97   : > { %2499 = dma.done.wait (%p3050_p0), %s281_s13, 512  }
  0x98   : > { %2501 = vsyncadd (%p3050_p0), %s281_s13, 4294966784  ;;  %p3051_p11 = scmp.eq.s32.totalorder %s2602_s25, 0 }
  0x9a   : > { %2503 = dma.done.wait (%p3051_p11), [#allocation8], 4608   ;;  %p3052_p6 = pmov %p3051_p11 }
  0x9c   : > { %2505 = vsyncadd (%p3052_p6), [#allocation8], 4294962688  ;;  %p3053_p4 = pmov %p3052_p6 }
  0x9e   : > { %2507 = dma.done.wait (%p3053_p4), [#allocation11], 3072   ;;  %p3054_p8 = pmov %p3053_p4 }
  0x9f   : > { %v2539_v0 = vmov 0.0|0.0   ;;  %vm2540_vm0 = vmmov 0   ;;  %v2541_v1 = vmov 0.0   ;;  %v336_v2 = vld [vmem:[#allocation10] sm:$0xff]  ;;  %v337_v3 = vld [vmem:[#allocation10 + $0x8] sm:$0xff]  ;;  %v338_v4 = vld [vmem:[#allocation10 + $0x10] sm:$0xff]  ;;  %v444_v39 = vlaneseq }
  0xa0   : > { %2509 = vsyncadd (%p3054_p8), [#allocation11], 4294964224  ;;  %2087 = vmatprep.subr.bf16.mxu0 %v2539_v0  ;;  %1899 = vmatprep.mubr.msk.f32.mxu0 %vm2540_vm0, %v2541_v1  ;;  %1198 = vst [vmem:[#allocation3] sm:$0x1] %v2541_v1  ;;  %vm344_vm1 = vcmask 523264   ;;  %v2088_v5 = vpack.c.bf16 %v337_v3, %v336_v2  ;;  %v339_v6 = vld [vmem:[#allocation10 + $0x18] sm:$0xff] }
  0xa1   : > { %1199 = vst [vmem:[#allocation3 + $0x18] sm:$0x1] %v2541_v1  ;;  %1200 = vst [vmem:[#allocation3 + $0x11] sm:$0x1] %v2541_v1  ;;  %2099 = vmatprep.subr.bf16.mxu1 %v2539_v0  ;;  %1918 = vmatprep.mubr.msk.f32.mxu1 %vm2540_vm0, %v2541_v1  ;;  %v340_v7 = vld [vmem:[#allocation10 + $0x20] sm:$0xff]  ;;  %v2091_v9 = vpack.c.bf16 %v339_v6, %v338_v4  ;;  %v333_v10 = vld [vmem:[%s284_s26 + $0x8] sm:$0xff] }
  0xa2   : > { %1201 = vst [vmem:[#allocation3 + $0x29] sm:$0x1] %v2541_v1  ;;  %v332_v8 = vld [vmem:[%s284_s26] sm:$0xff]  ;;  %2089 = vmatpush3.bf16.msra.mxu0 %v2088_v5  ;;  %v334_v11 = vld [vmem:[%s284_s26 + $0x10] sm:$0xff]  ;;  %v335_v12 = vld [vmem:[%s284_s26 + $0x18] sm:$0xff]  ;;  %2101 = vmatpush3.bf16.msra.mxu1 %v2088_v5  ;;  %v346_v15 = vsel %vm344_vm1, %v333_v10, 0.0 }
  0xa3   : > { %v345_v13 = vsel %vm344_vm1, %v332_v8, 0.0  ;;  %2090 = vmatprep.subr.bf16.mxu0 %v2539_v0  ;;  %v341_v14 = vld [vmem:[#allocation10 + $0x28] sm:$0xff]  ;;  %v354_v16 = vsel %vm344_vm1, %v334_v11, 0.0  ;;  %v355_v17 = vsel %vm344_vm1, %v335_v12, 0.0  ;;  %2102 = vmatprep.subr.bf16.mxu1 %v2539_v0  ;;  %v342_v20 = vld [vmem:[#allocation10 + $0x30] sm:$0xff]  ;;  %v343_v21 = vld [vmem:[#allocation10 + $0x38] sm:$0xff] }
  0xa4   : > { %v347_v18 = vadd.f32 %v346_v15, %v345_v13  ;;  %v356_v19 = vadd.f32 %v355_v17, %v354_v16  ;;  %v2094_v22 = vpack.c.bf16 %v341_v14, %v340_v7  ;;  %vm365_vm2 = vcmask 1041409   ;;  %s328_s30 = scalar_lea.vmem [#allocation13], %s1722_s9  ;;  %s1782_s11 = sshll.u32 %s2602_s25, 9 }
  0xa5   : > { %v2097_v27 = vpack.c.bf16 %v343_v21, %v342_v20  ;;  %v2542_v37 = vmov 1966171168   ;;  %v445_v41 = vshrl.u32 %v444_v39, 7  ;;  %vm622_vm3 = vcmask 516096   ;;  %v2274_v20 = vld [vmem:[#allocation7 + $0x30] sm:$0xff]   ;;  %v2275_v21 = vld [vmem:[#allocation7 + $0x38] sm:$0xff]   ;;  %s2980_s18 = scalar_lea.hbm %s3030_s6, %s1782_s11 }
  0xa6   : > { %2092 = vmatpush3.bf16.msra.mxu0 %v2091_v9  ;;  %v348_v23 = vrot.slane %v347_v18, 4  ;;  %v357_v24 = vrot.slane %v356_v19, 4  ;;  %2104 = vmatpush3.bf16.msra.mxu1 %v2091_v9  ;;  %v442_v38 = vunpack.c.l.s4 %v2542_v37  ;;  %623 = vst.msk [vmem:[#allocation2] sm:$0x1] %vm622_vm3, %v2541_v1  ;;  %624 = vst.msk [vmem:[#allocation2 + $0x18] sm:$0x1] %vm622_vm3, %v2541_v1 }
  0xa7   : > { %2093 = vmatprep.subr.bf16.mxu0 %v2539_v0  ;;  %2105 = vmatprep.subr.bf16.mxu1 %v2539_v0  ;;  %v2855_v47 = vsub.s32 0, %v445_v41  ;;  %625 = vst.msk [vmem:[#allocation2 + $0x11] sm:$0x1] %vm622_vm3, %v2541_v1  ;;  %626 = vst.msk [vmem:[#allocation2 + $0x29] sm:$0x1] %vm622_vm3, %v2541_v1  ;;  %s1599_s19 = sshll.u32 %s328_s30, 4  ;;  %s2975_s19 = int_to_ptr.vmem [resolvable:$true] %s1599_s19 }
  0xa8   : > { %v349_v25 = vadd.f32 %v348_v23, %v347_v18  ;;  %v358_v26 = vadd.f32 %v357_v24, %v356_v19  ;;  %v443_v40 = vunpack.c.0.s8 %v442_v38  ;;  %v2272_v18 = vld [vmem:[#allocation7 + $0x20] sm:$0xff]   ;;  %v2273_v19 = vld [vmem:[#allocation7 + $0x28] sm:$0xff]   ;;  %s1585_s25 = scalar_lea.sflag [#allocation6], %s2811_s12  ;;  %s2454_s7 = scalar_lea.vmem %s2975_s19, 512 }
  0xa9   : > { %v916_v23 = vld [vmem:[#allocation12] sm:$0xff]  ;;  %v917_v24 = vld [vmem:[#allocation12 + $0x8] sm:$0xff]  ;;  %p2455_p10 = scmp.ne.s32.totalorder %s2975_s19, %s2454_s7  ;;  %s2543_s15 = smov [#allocation13]  }
  0xaa   : > { %2095 = vmatpush3.bf16.msra.mxu0 %v2094_v22  ;;  %v350_v28 = vrot.slane %v349_v25, 2  ;;  %v359_v29 = vrot.slane %v358_v26, 2  ;;  %2107 = vmatpush3.bf16.msra.mxu1 %v2094_v22  ;;  %v2852_v42 = vsub.s32 %v443_v40, %v445_v41  ;;  %v2276_v22 = vld [vmem:[#allocation7] sm:$0xff]   ;;  %s2458_s10 = sshll.u32 %s2543_s15, 4  ;;  %s2459_s10 = int_to_ptr.vmem [resolvable:$false] %s2458_s10 }
  0xab   : > { %2096 = vmatprep.subr.bf16.mxu0 %v2539_v0  ;;  %2108 = vmatprep.subr.bf16.mxu1 %v2539_v0  ;;  %p2456_p5 = pnand %p2455_p10, %p2759_p3  ;;  %s2460_s9 = scalar_lea.vmem %s2459_s10, 1024 }
  0xac   : > { %v351_v30 = vadd.f32 %v350_v28, %v349_v25  ;;  %v360_v31 = vadd.f32 %v359_v29, %v358_v26  ;;  %v918_v25 = vld [vmem:[#allocation12 + $0x10] sm:$0xff]  ;;  %v2889_v26 = vpack.c.bf16 %v917_v24, %v916_v23  ;;  %v920_v29 = vld [vmem:[#allocation12 + $0x20] sm:$0xff]  ;;  %v925_v24 = vld [vmem:[#allocation12 + $0x48] sm:$0xff]  ;;  %p2461_p12 = scmp.lt.s32.totalorder %s2975_s19, %s2459_s10  ;;  %p2462_p1 = scmp.lt.s32.totalorder %s2460_s9, %s2454_s7 }
  0xad   : > { %v924_v23 = vld [vmem:[#allocation12 + $0x40] sm:$0xff]  ;;  %p2457_p7 = pneg %p2456_p5 }
  0xae   : > { %2098 = vmatpush3.bf16.msra.mxu0 %v2097_v27  ;;  %v352_v32 = vrot.slane %v351_v30, 1  ;;  %v361_v33 = vrot.slane %v360_v31, 1  ;;  %2110 = vmatpush3.bf16.msra.mxu1 %v2097_v27  ;;  %v919_v27 = vld [vmem:[#allocation12 + $0x18] sm:$0xff]  ;;  %p2463_p2 = por %p2462_p1, %p2461_p12 }
  0xaf   : > { %2111 = vmatprep.subr.bf16.mxu1 %v2539_v0  ;;  %1921 = vmatprep.subr.bf16.mxu0 %v2272_v18  ;;  %v2892_v28 = vpack.c.bf16 %v919_v27, %v918_v25  ;;  %v2124_v25 = vpack.c.bf16 %v925_v24, %v924_v23  ;;  %v926_v27 = vld [vmem:[#allocation12 + $0x50] sm:$0xff]  ;;  %v2285_v24 = vld [vmem:[#allocation9 + $0x40] sm:$0xff]  }
  0xb0   : > { %v353_v34 = vadd.f32 %v352_v32, %v351_v30  ;;  %v362_v35 = vadd.f32 %v361_v33, %v360_v31  ;;  %v921_v30 = vld [vmem:[#allocation12 + $0x28] sm:$0xff]  ;;  %p2464_p13 = pnand %p2463_p2, %p2457_p7 }
  0xb1   : > { %v2896_v31 = vpack.c.bf16 %v921_v30, %v920_v29  ;;  %v927_v29 = vld [vmem:[#allocation12 + $0x58] sm:$0xff] }
  0xb2   : > { %v366_v36 = vsel %vm365_vm2, %v362_v35, %v353_v34  ;;  %v2127_v30 = vpack.c.bf16 %v927_v29, %v926_v27  ;;  %v2284_v27 = vld [vmem:[#allocation9] sm:$0xff]   ;;  %v2289_v29 = vld [vmem:[#allocation9 + $0x50] sm:$0xff]  }
  0xb3   : > { %1900 = vmatmul.mubr.msk.f32.vlgmr.msra.gmra.mrb[0].mxu0 %vm344_vm1, %v366_v36 }
  0xb4   : > { %1922 = vmatpush3.bf16.msra.mxu0 %v2272_v18 }
  0xb5   : > { %1923 = vmatprep.subr.bf16.mxu0 %v2273_v19 }
  0xb8   : > { %1924 = vmatpush3.bf16.msra.mxu0 %v2273_v19 }
  0xb9   : > { %1925 = vmatprep.subr.bf16.mxu0 %v2274_v20 }
  0xbc   : > { %1926 = vmatpush3.bf16.msra.mxu0 %v2274_v20  ;;  %v922_v20 = vld [vmem:[#allocation12 + $0x30] sm:$0xff] }
  0xbd   : > { %1927 = vmatprep.subr.bf16.mxu0 %v2275_v21 }
  0xc0   : > { %1928 = vmatpush3.bf16.msra.mxu0 %v2275_v21  ;;  %v923_v21 = vld [vmem:[#allocation12 + $0x38] sm:$0xff] }
  0xc1   : > { %1933 = vmatprep.subr.bf16.mxu0 %v2276_v22 }
 0x186   : > { %v435_v43 = vpop.f32.mrb[0].mxu0 }
 0x187   : > { %v439_v44 = vmul.f32 0.00390625, %v435_v43  ;;  %v1901_v45 = vpop.f32.mrb[1].mxu0 }
 0x189   : > { %v447_v46 = vrot.slane %v439_v44, %v2852_v42 }
 0x18b   : > { %v448_v48 = vcombine.high %v447_v46, %v447_v46  ;;  %v455_v49 = vrot.slane %v447_v46, %v2852_v42 }
 0x18d   : > { %v462_v50 = vrot.slane %v448_v48, %v2852_v42  ;;  %v466_v51 = vrot.slane %v455_v49, %v2855_v47 }
 0x18f   : > { %v470_v52 = vrot.slane %v462_v50, %v2855_v47  ;;  %v2861_v53 = vsub.f32 %v332_v8, %v466_v51  ;;  %v2863_v54 = vsub.f32 %v333_v10, %v466_v51 }
 0x191   : > { %v2865_v55 = vsub.f32 %v334_v11, %v470_v52  ;;  %v2867_v56 = vsub.f32 %v335_v12, %v470_v52  ;;  %v477_v57 = vmul.f32 %v2861_v53, %v2861_v53  ;;  %v478_v58 = vmul.f32 %v2863_v54, %v2863_v54 }
 0x193   : > { %v479_v59 = vmul.f32 %v2865_v55, %v2865_v55  ;;  %v480_v60 = vmul.f32 %v2867_v56, %v2867_v56  ;;  %v481_v61 = vsel %vm344_vm1, %v477_v57, 0.0  ;;  %v482_v62 = vsel %vm344_vm1, %v478_v58, 0.0 }
 0x194   : > { %v483_v63 = vadd.f32 %v482_v62, %v481_v61 }
 0x195   : > { %v490_v2 = vsel %vm344_vm1, %v479_v59, 0.0  ;;  %v491_v3 = vsel %vm344_vm1, %v480_v60, 0.0 }
 0x196   : > { %v484_v4 = vrot.slane %v483_v63, 4  ;;  %v492_v5 = vadd.f32 %v491_v3, %v490_v2  ;;  %v2277_v3 = vld [vmem:[#allocation7 + $0x8] sm:$0xff]  }
 0x198   : > { %v485_v6 = vadd.f32 %v484_v4, %v483_v63  ;;  %v493_v7 = vrot.slane %v492_v5, 4 }
 0x19a   : > { %v486_v8 = vrot.slane %v485_v6, 2  ;;  %v494_v9 = vadd.f32 %v493_v7, %v492_v5  ;;  %v2278_v5 = vld [vmem:[#allocation7 + $0x10] sm:$0xff]   ;;  %v2280_v7 = vld [vmem:[#allocation7 + $0x40] sm:$0xff]  }
 0x19c   : > { %v487_v10 = vadd.f32 %v486_v8, %v485_v6  ;;  %v495_v11 = vrot.slane %v494_v9, 2  ;;  %v2279_v6 = vld [vmem:[#allocation7 + $0x18] sm:$0xff]  }
 0x19e   : > { %v488_v12 = vrot.slane %v487_v10, 1  ;;  %v496_v13 = vadd.f32 %v495_v11, %v494_v9 }
 0x1a0   : > { %v497_v14 = vrot.slane %v496_v13, 1  ;;  %v489_v15 = vadd.f32 %v488_v12, %v487_v10 }
 0x1a2   : > { %v498_v16 = vadd.f32 %v497_v14, %v496_v13  ;;  %v2281_v13 = vld [vmem:[#allocation7 + $0x48] sm:$0xff]  }
 0x1a4   : > { %v501_v17 = vsel %vm365_vm2, %v498_v16, %v489_v15  ;;  %v2282_v15 = vld [vmem:[#allocation7 + $0x50] sm:$0xff]   ;;  %v2283_v16 = vld [vmem:[#allocation7 + $0x58] sm:$0xff]  }
 0x1a5   : > { %1919 = vmatmul.mubr.msk.f32.vlgmr.msra.gmra.mrb[0].mxu1 %vm344_vm1, %v501_v17 }
 0x1a6   : > { %1989 = vmatprep.mubr.msk.f32.mxu1 %vm2540_vm0, %v2541_v1  ;;  %2113 = vmatpush3.bf16.msra.mxu1 %v2889_v26 }
 0x1a7   : > { %2114 = vmatprep.subr.bf16.mxu1 %v2539_v0 }
 0x1aa   : > { %2116 = vmatpush3.bf16.msra.mxu1 %v2892_v28 }
 0x1ab   : > { %2117 = vmatprep.subr.bf16.mxu1 %v2539_v0 }
 0x1ae   : > { %2119 = vmatpush3.bf16.msra.mxu1 %v2896_v31 }
 0x1af   : > { %2120 = vmatprep.subr.bf16.mxu1 %v2539_v0 }
 0x278   : > { %v570_v32 = vpop.f32.mrb[0].mxu1 }
 0x279   : > { %v574_v33 = vmul.f32 0.00390625, %v570_v32  ;;  %v1920_v34 = vpop.f32.mrb[1].mxu1  ;;  %v928_v32 = vld [vmem:[#allocation12 + $0x60] sm:$0xff] }
 0x27b   : > { %v575_v35 = vadd.f32 1e-05, %v574_v33  ;;  %v929_v33 = vld [vmem:[#allocation12 + $0x68] sm:$0xff] }
 0x27c   : > { %v2130_v34 = vpack.c.bf16 %v929_v33, %v928_v32  ;;  %v2291_v32 = vld [vmem:[#allocation9 + $0x58] sm:$0xff]   ;;  %v2288_v33 = vld [vmem:[#allocation9 + $0x10] sm:$0xff]  }
 0x27d   : > { %2308 = vrsqrt.f32 %v575_v35  ;;  %v930_v35 = vld [vmem:[#allocation12 + $0x70] sm:$0xff] }
 0x287   : > { %v2309_v36 = vpop.eup %2308 }
 0x288   : > { %v584_v37 = vrot.slane %v2309_v36, %v2852_v42  ;;  %v931_v36 = vld [vmem:[#allocation12 + $0x78] sm:$0xff] }
 0x28a   : > { %v585_v38 = vcombine.high %v584_v37, %v584_v37  ;;  %v592_v39 = vrot.slane %v584_v37, %v2852_v42  ;;  %v2133_v37 = vpack.c.bf16 %v931_v36, %v930_v35  ;;  %v2290_v35 = vld [vmem:[#allocation9 + $0x18] sm:$0xff]   ;;  %v2295_v36 = vld [vmem:[#allocation9 + $0x68] sm:$0xff]  }
 0x28c   : > { %v599_v40 = vrot.slane %v585_v38, %v2852_v42  ;;  %v603_v41 = vrot.slane %v592_v39, %v2855_v47 }
 0x28e   : > { %v607_v43 = vrot.slane %v599_v40, %v2855_v47  ;;  %v610_v44 = vmul.f32 %v603_v41, %v2861_v53  ;;  %v611_v45 = vmul.f32 %v603_v41, %v2863_v54 }
 0x290   : > { %v612_v46 = vmul.f32 %v607_v43, %v2865_v55  ;;  %v613_v48 = vmul.f32 %v607_v43, %v2867_v56  ;;  %v614_v49 = vmul.f32 0.01, %v610_v44  ;;  %v615_v50 = vmul.f32 0.01, %v611_v45 }
 0x292   : > { %v616_v51 = vmul.f32 0.01, %v612_v46  ;;  %v617_v52 = vmul.f32 0.01, %v613_v48  ;;  %v618_v57 = vmax.f32 %v610_v44, %v614_v49  ;;  %v619_v58 = vmax.f32 %v611_v45, %v615_v50 }
 0x294   : > { %v620_v59 = vmax.f32 %v612_v46, %v616_v51  ;;  %v621_v60 = vmax.f32 %v613_v48, %v617_v52  ;;  %627 = vst.msk [vmem:[#allocation2 + $0x1] sm:$0xff] %vm344_vm1, %v618_v57  ;;  %628 = vst.msk [vmem:[#allocation2 + $0x9] sm:$0xff] %vm344_vm1, %v619_v58 }
 0x296   : > { %629 = vst.msk [vmem:[#allocation2 + $0x19] sm:$0xff] %vm344_vm1, %v620_v59  ;;  %630 = vst.msk [vmem:[#allocation2 + $0x21] sm:$0xff] %vm344_vm1, %v621_v60 }
 0x29b   : > { %v645_v53 = vld [vmem:[#allocation2 + $0x1] sm:$0xff]  ;;  %v646_v54 = vld [vmem:[#allocation2 + $0x9] sm:$0xff] }
 0x29c   : > { %v649_v55 = vpack.c.bf16 %v646_v54, %v645_v53  ;;  %v631_v56 = vld [vmem:[#allocation2] sm:$0xff]  ;;  %v632_v61 = vld [vmem:[#allocation2 + $0x8] sm:$0xff] }
 0x29d   : > { %v647_v62 = vld [vmem:[#allocation2 + $0x19] sm:$0xff]  ;;  %v648_v63 = vld [vmem:[#allocation2 + $0x21] sm:$0xff]  ;;  %v635_v4 = vpack.c.bf16 %v632_v61, %v631_v56  ;;  %v819_v11 = vld [vmem:[#allocation2 + $0xa] sm:$0xff] }
 0x29e   : > { %1929 = vmatprep.mubr.msk.bf16.mxu0 %vm344_vm1, %v649_v55  ;;  %v650_v2 = vpack.c.bf16 %v648_v63, %v647_v62  ;;  %v633_v8 = vld [vmem:[#allocation2 + $0x18] sm:$0xff]  ;;  %v634_v9 = vld [vmem:[#allocation2 + $0x20] sm:$0xff] }
 0x29f   : > { %v818_v10 = vld [vmem:[#allocation2 + $0x2] sm:$0xff]  ;;  %v636_v12 = vpack.c.bf16 %v634_v9, %v633_v8  ;;  %v820_v17 = vld [vmem:[#allocation2 + $0x1a] sm:$0xff] }
 0x2a0   : > { %1930 = vmatmul.mubr.msk.bf16.vlgmr.msra.gmra.mrb[4].mxu0 %vm344_vm1, %v650_v2  ;;  %v822_v14 = vpack.c.bf16 %v819_v11, %v818_v10  ;;  %v821_v18 = vld [vmem:[#allocation2 + $0x22] sm:$0xff] }
 0x2a1   : > { %1934 = vmatpush3.bf16.msra.mxu0 %v2276_v22  ;;  %1941 = vmatprep.mubr.msk.bf16.mxu0 %vm344_vm1, %v635_v4  ;;  %v823_v19 = vpack.c.bf16 %v821_v18, %v820_v17  ;;  %v2121_v22 = vpack.c.bf16 %v923_v21, %v922_v20 }
 0x2a2   : > { %1935 = vmatprep.subr.bf16.mxu0 %v2277_v3 }
 0x2a3   : > { %2122 = vmatpush3.bf16.msra.mxu1 %v2121_v22 }
 0x2a4   : > { %2123 = vmatprep.subr.bf16.mxu1 %v2539_v0 }
 0x2a5   : > { %1936 = vmatpush3.bf16.msra.mxu0 %v2277_v3 }
 0x2a6   : > { %1937 = vmatprep.subr.bf16.mxu0 %v2278_v5 }
 0x2a7   : > { %2125 = vmatpush3.bf16.msra.mxu1 %v2124_v25 }
 0x2a8   : > { %2126 = vmatprep.subr.bf16.mxu1 %v2539_v0 }
 0x2a9   : > { %1938 = vmatpush3.bf16.msra.mxu0 %v2278_v5 }
 0x2aa   : > { %1939 = vmatprep.subr.bf16.mxu0 %v2279_v6 }
 0x2ab   : > { %2128 = vmatpush3.bf16.msra.mxu1 %v2127_v30 }
 0x2ac   : > { %2129 = vmatprep.subr.bf16.mxu1 %v2539_v0 }
 0x2ad   : > { %1940 = vmatpush3.bf16.msra.mxu0 %v2279_v6 }
 0x2ae   : > { %1945 = vmatprep.subr.bf16.mxu0 %v2280_v7 }
 0x2af   : > { %2131 = vmatpush3.bf16.msra.mxu1 %v2130_v34 }
 0x2b0   : > { %1942 = vmatmul.mubr.msk.bf16.vlgmr.msra.gmra.mrb[4].mxu0 %vm344_vm1, %v636_v12  ;;  %2132 = vmatprep.subr.bf16.mxu1 %v2539_v0 }
 0x2b1   : > { %1946 = vmatpush3.bf16.msra.mxu0 %v2280_v7  ;;  %1953 = vmatprep.mubr.msk.bf16.mxu0 %vm344_vm1, %v822_v14 }
 0x2b2   : > { %1947 = vmatprep.subr.bf16.mxu0 %v2281_v13 }
 0x2b3   : > { %2134 = vmatpush3.bf16.msra.mxu1 %v2133_v37 }
 0x2b4   : > { %2135 = vmatprep.subr.bf16.mxu1 %v2539_v0 }
 0x2b5   : > { %1948 = vmatpush3.bf16.msra.mxu0 %v2281_v13 }
 0x2b6   : > { %1949 = vmatprep.subr.bf16.mxu0 %v2282_v15 }
 0x2b9   : > { %1950 = vmatpush3.bf16.msra.mxu0 %v2282_v15 }
 0x2ba   : > { %1951 = vmatprep.subr.bf16.mxu0 %v2283_v16 }
 0x2bd   : > { %1952 = vmatpush3.bf16.msra.mxu0 %v2283_v16 }
 0x2be   : > { %2047 = vmatprep.subr.bf16.mxu0 %v2284_v27 }
 0x2c0   : > { %1954 = vmatmul.mubr.msk.bf16.vlgmr.msra.gmra.mrb[4].mxu0 %vm344_vm1, %v823_v19 }
 0x2c1   : > { %2048 = vmatpush3.bf16.msra.mxu0 %v2284_v27  ;;  %v1772_v27 = vld [vmem:[%s3029_s5] ss:$0 sm:$0xff] }
 0x393   : > { %v1955_v38 = vpop.f32.mrb[4].mxu0 }
 0x394   : > { %v897_v39 = vpop.f32.mrb[5].mxu0 }
 0x395   : > { %v1956_v40 = vpop.f32.mrb[6].mxu0 }
 0x396   : > { %v939_v41 = vadd.f32 %v1956_v40, %v1955_v38  ;;  %v900_v43 = vpop.f32.mrb[7].mxu0 }
 0x397   : > { %v932_v44 = vadd.f32 %v900_v43, %v897_v39 }
 0x398   : > { %v940_v45 = vrot.slane %v939_v41, 4 }
 0x399   : > { %v933_v46 = vrot.slane %v932_v44, 4 }
 0x39a   : > { %v941_v48 = vadd.f32 %v940_v45, %v939_v41  ;;  %v2296_v41 = vld [vmem:[#allocation9 + $0x30] sm:$0xff]  }
 0x39b   : > { %v934_v49 = vadd.f32 %v933_v46, %v932_v44  ;;  %v2300_v44 = vld [vmem:[#allocation9 + $0x80] sm:$0xff]  }
 0x39c   : > { %v942_v50 = vrot.slane %v941_v48, 2 }
 0x39d   : > { %v935_v51 = vrot.slane %v934_v49, 2 }
 0x39e   : > { %v943_v52 = vadd.f32 %v942_v50, %v941_v48 }
 0x39f   : > { %v936_v57 = vadd.f32 %v935_v51, %v934_v49 }
 0x3a0   : > { %v944_v58 = vrot.slane %v943_v52, 1 }
 0x3a1   : > { %v937_v59 = vrot.slane %v936_v57, 1 }
 0x3a2   : > { %v945_v60 = vadd.f32 %v944_v58, %v943_v52 }
 0x3a3   : > { %v938_v53 = vadd.f32 %v937_v59, %v936_v57 }
 0x3a5   : > { %v948_v54 = vsel %vm365_vm2, %v945_v60, %v938_v53 }
 0x3a6   : > { %1990 = vmatmul.mubr.f32.vlgmr.msra.gmra.mrb[2].mxu1 %v948_v54 }
 0x3a7   : > { %2137 = vmatpush3.bf16.msra.mxu1 %v2889_v26  ;;  %2024 = vmatprep.mubr.msk.f32.mxu1 %vm2540_vm0, %v2541_v1 }
 0x3a8   : > { %2138 = vmatprep.subr.bf16.mxu1 %v2539_v0 }
 0x3ab   : > { %2140 = vmatpush3.bf16.msra.mxu1 %v2892_v28 }
 0x3ac   : > { %2141 = vmatprep.subr.bf16.mxu1 %v2539_v0 }
 0x3af   : > { %2143 = vmatpush3.bf16.msra.mxu1 %v2896_v31 }
 0x3b0   : > { %2144 = vmatprep.subr.bf16.mxu1 %v2539_v0 }
 0x3b3   : > { %2146 = vmatpush3.bf16.msra.mxu1 %v2121_v22 }
 0x3b4   : > { %2147 = vmatprep.subr.bf16.mxu1 %v2539_v0 }
 0x3b7   : > { %2149 = vmatpush3.bf16.msra.mxu1 %v2124_v25  ;;  %v2287_v25 = vld [vmem:[#allocation9 + $0x48] sm:$0xff]  }
 0x3b8   : > { %2150 = vmatprep.subr.bf16.mxu1 %v2539_v0 }
 0x3bb   : > { %2152 = vmatpush3.bf16.msra.mxu1 %v2127_v30  ;;  %v2286_v30 = vld [vmem:[#allocation9 + $0x8] sm:$0xff]  }
 0x3bc   : > { %2153 = vmatprep.subr.bf16.mxu1 %v2539_v0  ;;  %2049 = vmatprep.subr.bf16.mxu0 %v2286_v30 }
 0x3bd   : > { %2050 = vmatpush3.bf16.msra.mxu0 %v2286_v30 }
 0x3be   : > { %2051 = vmatprep.subr.bf16.mxu0 %v2288_v33 }
 0x3bf   : > { %2155 = vmatpush3.bf16.msra.mxu1 %v2130_v34  ;;  %v2293_v34 = vld [vmem:[#allocation9 + $0x60] sm:$0xff]  }
 0x3c0   : > { %2156 = vmatprep.subr.bf16.mxu1 %v2539_v0 }
 0x3c1   : > { %2052 = vmatpush3.bf16.msra.mxu0 %v2288_v33 }
 0x3c2   : > { %2053 = vmatprep.subr.bf16.mxu0 %v2290_v35 }
 0x3c3   : > { %2158 = vmatpush3.bf16.msra.mxu1 %v2133_v37  ;;  %v2292_v37 = vld [vmem:[#allocation9 + $0x20] sm:$0xff]  }
 0x3c4   : > { %2027 = vmatprep.subr.bf16.mxu1 %v2285_v24 }
 0x3c5   : > { %2054 = vmatpush3.bf16.msra.mxu0 %v2290_v35 }
 0x3c6   : > { %2055 = vmatprep.subr.bf16.mxu0 %v2292_v37 }
 0x3c9   : > { %2056 = vmatpush3.bf16.msra.mxu0 %v2292_v37 }
 0x479   : > { %v1016_v1 = vpop.f32.mrb[2].mxu1 }
 0x47a   : > { %v1020_v26 = vmul.f32 0.00390625, %v1016_v1  ;;  %v1991_v28 = vpop.f32.mrb[3].mxu1 }
 0x47c   : > { %v1028_v31 = vrot.slane %v1020_v26, %v2852_v42 }
 0x47e   : > { %v1029_v55 = vcombine.high %v1028_v31, %v1028_v31  ;;  %v1036_v56 = vrot.slane %v1028_v31, %v2852_v42 }
 0x480   : > { %v1043_v61 = vrot.slane %v1029_v55, %v2852_v42  ;;  %v1047_v62 = vrot.slane %v1036_v56, %v2855_v47 }
 0x482   : > { %v1051_v63 = vrot.slane %v1043_v61, %v2855_v47  ;;  %v2943_v2 = vsub.f32 %v897_v39, %v1047_v62  ;;  %v2945_v3 = vsub.f32 %v900_v43, %v1047_v62  ;;  %v2294_v39 = vld [vmem:[#allocation9 + $0x28] sm:$0xff]   ;;  %v2298_v43 = vld [vmem:[#allocation9 + $0x38] sm:$0xff]  }
 0x483   : > { %2057 = vmatprep.subr.bf16.mxu0 %v2294_v39 }
 0x484   : > { %v2947_v0 = vsub.f32 %v1955_v38, %v1051_v63  ;;  %v2949_v4 = vsub.f32 %v1956_v40, %v1051_v63  ;;  %v1058_v5 = vmul.f32 %v2943_v2, %v2943_v2  ;;  %v1059_v6 = vmul.f32 %v2945_v3, %v2945_v3  ;;  %v2297_v38 = vld [vmem:[#allocation9 + $0x70] sm:$0xff]   ;;  %v2299_v40 = vld [vmem:[#allocation9 + $0x78] sm:$0xff]   ;;  %2058 = vmatpush3.bf16.msra.mxu0 %v2294_v39 }
 0x485   : > { %2059 = vmatprep.subr.bf16.mxu0 %v2296_v41 }
 0x486   : > { %v1060_v7 = vmul.f32 %v2947_v0, %v2947_v0  ;;  %v1061_v8 = vmul.f32 %v2949_v4, %v2949_v4  ;;  %v1062_v9 = vadd.f32 %v1059_v6, %v1058_v5 }
 0x488   : > { %v1063_v10 = vrot.slane %v1062_v9, 4  ;;  %v1069_v11 = vadd.f32 %v1061_v8, %v1060_v7  ;;  %2060 = vmatpush3.bf16.msra.mxu0 %v2296_v41 }
 0x489   : > { %2061 = vmatprep.subr.bf16.mxu0 %v2298_v43 }
 0x48a   : > { %v1064_v12 = vadd.f32 %v1063_v10, %v1062_v9  ;;  %v1070_v13 = vrot.slane %v1069_v11, 4  ;;  %v2301_v10 = vld [vmem:[#allocation9 + $0x88] sm:$0xff]  }
 0x48c   : > { %v1065_v14 = vrot.slane %v1064_v12, 2  ;;  %v1071_v15 = vadd.f32 %v1070_v13, %v1069_v11  ;;  %2062 = vmatpush3.bf16.msra.mxu0 %v2298_v43  ;;  %v2303_v13 = vld [vmem:[#allocation9 + $0x98] sm:$0xff]  }
 0x48d   : > { %2067 = vmatprep.subr.bf16.mxu0 %v2300_v44 }
 0x48e   : > { %v1066_v16 = vadd.f32 %v1065_v14, %v1064_v12  ;;  %v1072_v17 = vrot.slane %v1071_v15, 2  ;;  %v2302_v12 = vld [vmem:[#allocation9 + $0x90] sm:$0xff]   ;;  %v2304_v14 = vld [vmem:[#allocation9 + $0xa0] sm:$0xff]  }
 0x490   : > { %v1067_v18 = vrot.slane %v1066_v16, 1  ;;  %v1073_v19 = vadd.f32 %v1072_v17, %v1071_v15  ;;  %v2305_v15 = vld [vmem:[#allocation9 + $0xa8] sm:$0xff]   ;;  %v2307_v17 = vld [vmem:[#allocation9 + $0xb8] sm:$0xff]  }
 0x492   : > { %v1074_v20 = vrot.slane %v1073_v19, 1  ;;  %v1068_v21 = vadd.f32 %v1067_v18, %v1066_v16  ;;  %v2306_v16 = vld [vmem:[#allocation9 + $0xb0] sm:$0xff]  }
 0x494   : > { %v1075_v22 = vadd.f32 %v1074_v20, %v1073_v19 }
 0x496   : > { %v1078_v23 = vsel %vm365_vm2, %v1075_v22, %v1068_v21 }
 0x497   : > { %2025 = vmatmul.mubr.f32.vlgmr.msra.gmra.mrb[4].mxu1 %v1078_v23 }
 0x498   : > { %2028 = vmatpush3.bf16.msra.mxu1 %v2285_v24 }
 0x499   : > { %2029 = vmatprep.subr.bf16.mxu1 %v2287_v25 }
 0x49c   : > { %2030 = vmatpush3.bf16.msra.mxu1 %v2287_v25 }
 0x49d   : > { %2031 = vmatprep.subr.bf16.mxu1 %v2289_v29 }
 0x4a0   : > { %2032 = vmatpush3.bf16.msra.mxu1 %v2289_v29 }
 0x4a1   : > { %2033 = vmatprep.subr.bf16.mxu1 %v2291_v32 }
 0x4a4   : > { %2034 = vmatpush3.bf16.msra.mxu1 %v2291_v32 }
 0x4a5   : > { %2035 = vmatprep.subr.bf16.mxu1 %v2293_v34 }
 0x4a8   : > { %2036 = vmatpush3.bf16.msra.mxu1 %v2293_v34 }
 0x4a9   : > { %2037 = vmatprep.subr.bf16.mxu1 %v2295_v36 }
 0x4ac   : > { %2038 = vmatpush3.bf16.msra.mxu1 %v2295_v36 }
 0x4ad   : > { %2039 = vmatprep.subr.bf16.mxu1 %v2297_v38 }
 0x4b0   : > { %2040 = vmatpush3.bf16.msra.mxu1 %v2297_v38 }
 0x4b1   : > { %2041 = vmatprep.subr.bf16.mxu1 %v2299_v40 }
 0x4b4   : > { %2042 = vmatpush3.bf16.msra.mxu1 %v2299_v40 }
 0x56a   : > { %v1146_v45 = vpop.f32.mrb[4].mxu1 }
 0x56b   : > { %v1150_v46 = vmul.f32 0.00390625, %v1146_v45  ;;  %v2026_v48 = vpop.f32.mrb[5].mxu1 }
 0x56d   : > { %v1151_v49 = vadd.f32 1e-05, %v1150_v46 }
 0x56f   : > { %2310 = vrsqrt.f32 %v1151_v49 }
 0x579   : > { %v2311_v50 = vpop.eup %2310 }
 0x57a   : > { %v1160_v51 = vrot.slane %v2311_v50, %v2852_v42 }
 0x57c   : > { %v1161_v52 = vcombine.high %v1160_v51, %v1160_v51  ;;  %v1168_v57 = vrot.slane %v1160_v51, %v2852_v42 }
 0x57e   : > { %v1175_v58 = vrot.slane %v1161_v52, %v2852_v42  ;;  %v1179_v59 = vrot.slane %v1168_v57, %v2855_v47 }
 0x580   : > { %v1183_v60 = vrot.slane %v1175_v58, %v2855_v47  ;;  %v1186_v53 = vmul.f32 %v1179_v59, %v2943_v2  ;;  %v1187_v54 = vmul.f32 %v1179_v59, %v2945_v3 }
 0x582   : > { %v1188_v1 = vmul.f32 %v1183_v60, %v2947_v0  ;;  %v1189_v26 = vmul.f32 %v1183_v60, %v2949_v4  ;;  %v1190_v28 = vmul.f32 0.01, %v1186_v53  ;;  %v1191_v31 = vmul.f32 0.01, %v1187_v54 }
 0x584   : > { %v1192_v55 = vmul.f32 0.01, %v1188_v1  ;;  %v1193_v56 = vmul.f32 0.01, %v1189_v26  ;;  %v1194_v61 = vmax.f32 %v1186_v53, %v1190_v28  ;;  %v1195_v62 = vmax.f32 %v1187_v54, %v1191_v31 }
 0x586   : > { %v1196_v63 = vmax.f32 %v1188_v1, %v1192_v55  ;;  %v1197_v42 = vmax.f32 %v1189_v26, %v1193_v56  ;;  %1202 = vst [vmem:[#allocation3 + $0x1] sm:$0xff] %v1194_v61  ;;  %1203 = vst [vmem:[#allocation3 + $0x9] sm:$0xff] %v1195_v62  ;;  %v1232_v5 = vpack.c.bf16 %v1195_v62, %v1194_v61 }
 0x588   : > { %1204 = vst [vmem:[#allocation3 + $0x19] sm:$0xff] %v1196_v63  ;;  %1205 = vst [vmem:[#allocation3 + $0x21] sm:$0xff] %v1197_v42  ;;  %2043 = vmatprep.mubr.bf16.mxu1 %v1232_v5  ;;  %v1233_v47 = vpack.c.bf16 %v1197_v42, %v1196_v63 }
 0x58a   : > { %2044 = vmatmul.mubr.bf16.vlgmr.msra.gmra.mrb[8].mxu1 %v1233_v47 }
 0x58d   : > { %v1206_v2 = vld [vmem:[#allocation3] sm:$0xff]  ;;  %v1207_v3 = vld [vmem:[#allocation3 + $0x8] sm:$0xff] }
 0x58e   : > { %v1210_v0 = vpack.c.bf16 %v1207_v3, %v1206_v2  ;;  %v1445_v4 = vld [vmem:[#allocation3 + $0x2] sm:$0xff]  ;;  %v1446_v6 = vld [vmem:[#allocation3 + $0xa] sm:$0xff] }
 0x58f   : > { %v1208_v7 = vld [vmem:[#allocation3 + $0x18] sm:$0xff]  ;;  %v1209_v8 = vld [vmem:[#allocation3 + $0x20] sm:$0xff]  ;;  %v1449_v11 = vpack.c.bf16 %v1446_v6, %v1445_v4 }
 0x590   : > { %2063 = vmatprep.mubr.bf16.mxu0 %v1210_v0  ;;  %v1211_v9 = vpack.c.bf16 %v1209_v8, %v1208_v7  ;;  %v1447_v18 = vld [vmem:[#allocation3 + $0x1a] sm:$0xff]  ;;  %v1448_v19 = vld [vmem:[#allocation3 + $0x22] sm:$0xff] }
 0x591   : > { %v1450_v20 = vpack.c.bf16 %v1448_v19, %v1447_v18 }
 0x592   : > { %2064 = vmatmul.mubr.bf16.vlgmr.msra.gmra.mrb[8].mxu0 %v1211_v9 }
 0x593   : > { %2068 = vmatpush3.bf16.msra.mxu0 %v2300_v44  ;;  %2083 = vmatprep.mubr.bf16.mxu0 %v1449_v11 }
 0x594   : > { %2069 = vmatprep.subr.bf16.mxu0 %v2301_v10 }
 0x597   : > { %2070 = vmatpush3.bf16.msra.mxu0 %v2301_v10 }
 0x598   : > { %2071 = vmatprep.subr.bf16.mxu0 %v2302_v12 }
 0x59b   : > { %2072 = vmatpush3.bf16.msra.mxu0 %v2302_v12 }
 0x59c   : > { %2073 = vmatprep.subr.bf16.mxu0 %v2303_v13 }
 0x59f   : > { %2074 = vmatpush3.bf16.msra.mxu0 %v2303_v13 }
 0x5a0   : > { %2075 = vmatprep.subr.bf16.mxu0 %v2304_v14 }
 0x5a3   : > { %2076 = vmatpush3.bf16.msra.mxu0 %v2304_v14 }
 0x5a4   : > { %2077 = vmatprep.subr.bf16.mxu0 %v2305_v15 }
 0x5a7   : > { %2078 = vmatpush3.bf16.msra.mxu0 %v2305_v15 }
 0x5a8   : > { %2079 = vmatprep.subr.bf16.mxu0 %v2306_v16 }
 0x5ab   : > { %2080 = vmatpush3.bf16.msra.mxu0 %v2306_v16 }
 0x5ac   : > { %2081 = vmatprep.subr.bf16.mxu0 %v2307_v17 }
 0x5af   : > { %2082 = vmatpush3.bf16.msra.mxu0 %v2307_v17 }
 0x5b2   : > { %2084 = vmatmul.mubr.bf16.vlgmr.msra.gmra.mrb[8].mxu0 %v1450_v20 }
 0x65d   : > { %v2045_v21 = vpop.f32.mrb[8].mxu1 }
 0x65e   : > { %v1333_v22 = vpop.f32.mrb[9].mxu1 }
 0x65f   : > { %v2046_v23 = vpop.f32.mrb[10].mxu1 }
 0x660   : > { %v1336_v24 = vpop.f32.mrb[11].mxu1 }
 0x685   : > { %v2085_v25 = vpop.f32.mrb[8].mxu0 }
 0x686   : > { %v2159_v29 = vadd.f32 %v2085_v25, %v2045_v21  ;;  %v1550_v30 = vpop.f32.mrb[9].mxu0 }
 0x687   : > { %v2160_v32 = vadd.f32 %v1550_v30, %v1333_v22  ;;  %v2086_v33 = vpop.f32.mrb[10].mxu0 }
 0x688   : > { %v1578_v34 = vadd.f32 %v2159_v29, %v1772_v27  ;;  %v2161_v35 = vadd.f32 %v2086_v33, %v2046_v23  ;;  %v1553_v36 = vpop.f32.mrb[11].mxu0 }
 0x689   : > { %v1576_v37 = vadd.f32 %v2160_v32, %v1772_v27  ;;  %v2162_v38 = vadd.f32 %v1553_v36, %v1336_v24 }
 0x68a   : > { %1582 = vst [vmem:[%s328_s30 + $0x10] sm:$0xff] %v1578_v34  ;;  %v1579_v39 = vadd.f32 %v2161_v35, %v1772_v27 }
 0x68b   : > { %1580 = vst [vmem:[%s328_s30] sm:$0xff] %v1576_v37  ;;  %v1577_v40 = vadd.f32 %v2162_v38, %v1772_v27 }
 0x68c   : > { %1583 = vst [vmem:[%s328_s30 + $0x18] sm:$0xff] %v1579_v39 }
 0x68d   : > { %1581 = vst [vmem:[%s328_s30 + $0x8] sm:$0xff] %v1577_v40 }
 0x68e   : > { %2467 = shalt.err (!%p2464_p13)
}
 0x68f   : > { %s2468_s13 = scalar_lea.hbm %s2980_s18, 512  ;;  %s2472_s29 = scalar_lea.hbm %s3030_s6, 1024 }
 0x690   : > { %p2469_p9 = scmp.ne.s32.totalorder %s2980_s18, %s2468_s13  ;;  %p2473_p6 = scmp.lt.u32.totalorder %s2980_s18, %s3030_s6 }
 0x691   : > { %p2474_p4 = scmp.lt.u32.totalorder %s2472_s29, %s2468_s13  ;;  %p2476_p10 = scmp.lt.u32.totalorder %s2468_s13, %s2980_s18 }
 0x692   : > { %p2470_p0 = pnand %p2469_p9, %p2759_p3 }
 0x693   : > { %p2475_p8 = por %p2474_p4, %p2473_p6 }
 0x694   : > { %p2471_p11 = pneg %p2470_p0 }
 0x695   : > { %p2477_p5 = por %p2476_p10, %p2475_p8 }
 0x697   : > { %p2478_p7 = pnand %p2477_p5, %p2471_p11 }
 0x699   : > { %2481 = shalt.err (!%p2478_p7)
}
 0x69a   : > { %s2544_s20 = smov 128   ;;  %s2545_s16 = smov 8  }
 0x69b   : > { %2193 = dma.vmem_to_hbm [thread:$0]  (%p2759_p3), %s2975_s19, 512, %s2980_s18, %s1585_s25, %s2544_s20, %s2544_s20, %s2545_s16  }
 0x69c PF: > { %s1614_s7 = sand.u32 1, %s2516_s21   ;;  %p3055_p12 = scmp.ne.s32.totalorder %s3039_s28, 0 }
 0x69d   : > { %p3056_p1 = scmp.ge.s32.totalorder %s2528_s24, 2  ;;  %s1615_s15 = scalar_lea.sflag [#allocation6], %s1614_s7 }
 0x69f   : > { %p2213_p2 = pnand %p3056_p1, %p3055_p12 }
 0x6a1   : > { %2511 = dma.done.wait (!%p2213_p2), %s1615_s15, 512  }
 0x6a2   : > { %2513 = vsyncadd (!%p2213_p2), %s1615_s15, 4294966784  ;;  %p21_p13 = scmp.ge.s32.totalorder %s2746_s8, 4   ;;  %s3057_s21 = smov %s2520_s22 }
 0x6a3   : > { %s3058_s22 = smov %s2524_s23  ;;  %s3059_s23 = smov %s2755_s14 }
 0x6a4   : > { %s3060_s24 = smov %s2746_s8  ;;  %23 = sbr.rel (!%p21_p13) target bundleno = 7 (0x7), region = 109 }
 0x6ab   :  { %1620 = vsyncpa [#allocation5], 1 }
 0x6ac   :  { %1622 = vsyncpa [#allocation5 + $0x1], 1 }
 0x6ad   :  { %1623 = vsyncpa [#allocation8], 1 }
 0x6ae   :  { %1624 = vsyncpa [#allocation11], 1 }
 0x6af   :  { %1625 = vsyncpa [#allocation6], 1 }
 0x6b0   :  { %1627 = vsyncpa [#allocation6 + $0x1], 1 }

</bundles_post_ra>
